<compile_context>
chip_gen: v5e
topology: v5e:2x2
jax: 0.10.0
libtpu: 0.0.40
codegen_flags: <defaults>
</compile_context>

<pallas_src>
from functools import partial

import jax
import jax.numpy as jnp
from jax.experimental import pallas as pl
from jax.experimental.pallas import tpu as pltpu


HIDDEN = 128
TILE_ROWS = 256  # rows per grid step; >=256 keeps the MXU M-dim busy on v6e/v7x
                 # and fits easily in v7x's 64 MiB VMEM (weights ~192 KiB bf16).


def word_encoder_kernel(x_ref, w1_ref, b1_ref, w2_ref, b2_ref, out_ref, *,
                        word_len):
    """One (TILE_ROWS, 128) slab of stacked words -> two fused k=3 convs."""
    M, H = out_ref.shape

    # Per-word boundary masks, hoisted once and reused by both convs.
    # Tiles always start at a word boundary, so (local row % word_len) is the
    # in-word position.
    row = jax.lax.broadcasted_iota(jnp.int32, (M, 1), 0)
    pos = row % word_len
    first_mask = pos == 0                 # t == 0 inside the word
    last_mask = pos == word_len - 1       # t == L-1 inside the word

    def conv_k3(x):
        """Return (M, 3H) bf16 tap-concat [x[t-1], x[t], x[t+1]] (zero-padded)."""
        x_prev = jnp.where(first_mask, 0.0, pltpu.roll(x, shift=1, axis=0))
        x_next = jnp.where(last_mask, 0.0, pltpu.roll(x, shift=M - 1, axis=0))
        # masking in f32; single cast to bf16 right before the MXU
        return jnp.concatenate([x_prev, x, x_next], axis=1).astype(jnp.bfloat16)

    # conv1 (no nonlinearity, as in the PyTorch module)
    y = jnp.dot(conv_k3(x_ref[...]), w1_ref[...],
                preferred_element_type=jnp.float32) + b1_ref[...]
    # conv2
    out_ref[...] = jnp.dot(conv_k3(y), w2_ref[...],
                           preferred_element_type=jnp.float32) + b2_ref[...]


def prepare_params(emb, conv1_w, conv1_b, conv2_w, conv2_b):
    """One-time weight prep (transpose/concat/cast) - do NOT redo per call."""
    H = conv1_w.shape[0]

    def prep_w(w):
        # PyTorch (O, I, K) -> per-tap (K, I, O) -> concat taps on rows (3I, O)
        # so y = [x_prev | x | x_next] @ w_cat matches
        # sum_{i,k} W[o,i,k] * x_in[i, t+k-1].
        return jnp.transpose(w, (2, 1, 0)).reshape(3 * H, H).astype(jnp.bfloat16)

    return dict(
        emb=emb.astype(jnp.float32),
        w1=prep_w(conv1_w), b1=conv1_b.reshape(1, H).astype(jnp.float32),
        w2=prep_w(conv2_w), b2=conv2_b.reshape(1, H).astype(jnp.float32),
    )


@partial(jax.jit, static_argnames=("max_length",))
def word_encoder_cnn_batched(idx_batch, params, *, max_length):
    """Encode a batch of words.

    idx_batch: (W, max_length) int32, already padded with glue letter 2.
    Returns (W, max_length, hidden) float32.
    """
    W = idx_batch.shape[0]
    H = params["b1"].shape[1]

    words_per_tile = max(TILE_ROWS // max_length, 1)
    tile_rows = words_per_tile * max_length
    W_pad = ((W + words_per_tile - 1) // words_per_tile) * words_per_tile
    if W_pad != W:  # pad batch with dummy glue-only words (sliced off below)
        pad = jnp.full((W_pad - W, max_length), 2, jnp.int32)
        idx_batch = jnp.concatenate([idx_batch, pad], axis=0)

    # Embedding lookup as a plain XLA gather (moved out of the kernel).
    x = params["emb"][idx_batch.reshape(-1)]          # (W_pad*L, H) f32

    num_tiles = (W_pad * max_length) // tile_rows
    out = pl.pallas_call(
        partial(word_encoder_kernel, word_len=max_length),
        out_shape=jax.ShapeDtypeStruct((W_pad * max_length, H), jnp.float32),
        grid=(num_tiles,),
        in_specs=[
            pl.BlockSpec((tile_rows, H), lambda i: (i, 0)),   # activations
            pl.BlockSpec((3 * H, H), lambda i: (0, 0)),       # w1 (resident)
            pl.BlockSpec((1, H), lambda i: (0, 0)),           # b1 (resident)
            pl.BlockSpec((3 * H, H), lambda i: (0, 0)),       # w2 (resident)
            pl.BlockSpec((1, H), lambda i: (0, 0)),           # b2 (resident)
        ],
        out_specs=pl.BlockSpec((tile_rows, H), lambda i: (i, 0)),
        compiler_params=pltpu.CompilerParams(
            dimension_semantics=("parallel",)),               # 2 TCs on v7x
    )(x, params["w1"], params["b1"], params["w2"], params["b2"])

    return out.reshape(W_pad, max_length, H)[:W]


def word_encoder_cnn(input_idx, params, max_length):
    """Single-word forward matching WordEncoderCNN.forward -> (out, out)."""
    L_in = input_idx.shape[0]
    ext = jnp.full((max_length - L_in,), 2, jnp.int32)
    idx_full = jnp.concatenate([input_idx.astype(jnp.int32), ext], axis=0)
    out = word_encoder_cnn_batched(idx_full[None], params,
                                   max_length=max_length)[0]
    return out, out


if __name__ == "__main__":
    # small, deterministic problem consistent with the module
    n_letters, lang_num, hidden_size, max_length = 32, 4, HIDDEN, 16
    num_words = 32

    key = jax.random.PRNGKey(0)
    k1, k2, k3, k4, k5, k6, k7 = jax.random.split(key, 7)

    emb = jax.random.normal(k1, (n_letters, 128), jnp.float32)      # nn.Embedding
    bound = 1.0 / (hidden_size * 3) ** 0.5                          # Conv1d default init scale
    conv1_w = jax.random.uniform(k2, (hidden_size, hidden_size, 3),
                                 jnp.float32, -bound, bound)
    conv1_b = jax.random.uniform(k3, (hidden_size,), jnp.float32, -bound, bound)
    conv2_w = jax.random.uniform(k4, (hidden_size, hidden_size, 3),
                                 jnp.float32, -bound, bound)
    conv2_b = jax.random.uniform(k5, (hidden_size,), jnp.float32, -bound, bound)

    params = prepare_params(emb, conv1_w, conv1_b, conv2_w, conv2_b)

    # a batch of words with random lengths, padded with the glue letter 2
    lengths = jax.random.randint(k6, (num_words,), 4, max_length + 1)
    raw_idx = jax.random.randint(k7, (num_words, max_length), 0, n_letters,
                                 jnp.int32)
    pos = jnp.arange(max_length)[None, :]
    idx_batch = jnp.where(pos < lengths[:, None], raw_idx, 2).astype(jnp.int32)

    # ---- run the batched kernel ------------------------------------------
    out = word_encoder_cnn_batched(idx_batch, params, max_length=max_length)
    out = jax.block_until_ready(out)

    # ---- single-word API (module semantics: returns (output, output)) -----
    word0 = raw_idx[0, : int(lengths[0])]
    out0, out0_dup = word_encoder_cnn(word0, params, max_length)
    out0 = jax.block_until_ready(out0)

    # ---- pure-JAX f32 reference (same math via lax.conv, NCW) -------------
    x_ref = emb[idx_batch]                      # (W, L, 128) == view(1,-1,H)
    xc = jnp.transpose(x_ref, (0, 2, 1))        # (W, H, L)  -- PyTorch NCW

    def ref_conv(xc, w, b):
        y = jax.lax.conv_general_dilated(xc, w, (1,), [(1, 1)],
                                         dimension_numbers=("NCH", "OIH", "NCH"))
        return y + b[None, :, None]

    yc = ref_conv(ref_conv(xc, conv1_w, conv1_b), conv2_w, conv2_b)
    ref = jnp.transpose(yc, (0, 2, 1))          # (W, max_length, hidden)

    assert out.shape == (num_words, max_length, hidden_size)
    assert out0.shape == (max_length, hidden_size)
    # bf16 matmul operands with f32 accumulation -> ~1e-3 level deviation vs f32
    assert jnp.allclose(out, ref, atol=1e-2, rtol=1e-2), \
        float(jnp.max(jnp.abs(out - ref)))
    assert jnp.allclose(out0, ref[0], atol=1e-2, rtol=1e-2), \
        float(jnp.max(jnp.abs(out0 - ref[0])))
    print("KERNEL_OK")
</pallas_src>

<mosaic_0001>
module attributes {stable_mosaic.version = 11 : i64} {
  func.func @word_encoder_kernel(%arg0: i32, %arg1: memref<256x128xf32, #tpu.memory_space<vmem>>, %arg2: memref<384x128xbf16, #tpu.memory_space<vmem>>, %arg3: memref<1x128xf32, #tpu.memory_space<vmem>>, %arg4: memref<384x128xbf16, #tpu.memory_space<vmem>>, %arg5: memref<1x128xf32, #tpu.memory_space<vmem>>, %arg6: memref<256x128xf32, #tpu.memory_space<vmem>>) attributes {dimension_semantics = [#tpu.dimension_semantics<parallel>], iteration_bounds = array<i64: 2>, scalar_prefetch = 0 : i64, scratch_operands = 0 : i64, tpu.core_type = #tpu.core_type<tc>, window_params = [{transform_indices = @transform_0, window_bounds = array<i64: 256, 128>}, {pipeline_mode = #tpu.pipeline_mode<synchronous>, transform_indices = @transform_1, window_bounds = array<i64: 384, 128>}, {pipeline_mode = #tpu.pipeline_mode<synchronous>, transform_indices = @transform_2, window_bounds = array<i64: 1, 128>}, {pipeline_mode = #tpu.pipeline_mode<synchronous>, transform_indices = @transform_3, window_bounds = array<i64: 384, 128>}, {pipeline_mode = #tpu.pipeline_mode<synchronous>, transform_indices = @transform_4, window_bounds = array<i64: 1, 128>}, {transform_indices = @transform_5, window_bounds = array<i64: 256, 128>}]} {
    %0 = tpu.iota {dimensions = array<i32: 0>} : vector<256x1xi32>
    %c16_i32 = arith.constant 16 : i32
    %c0_i32 = arith.constant 0 : i32
    %1 = arith.cmpi eq, %c16_i32, %c0_i32 : i32
    %c1_i32 = arith.constant 1 : i32
    %2 = arith.select %1, %c1_i32, %c16_i32 : i32
    %3 = vector.broadcast %2 : i32 to vector<256x1xi32>
    %4 = arith.remsi %0, %3 : vector<256x1xi32>
    %c0_i32_0 = arith.constant 0 : i32
    %5 = vector.broadcast %c0_i32_0 : i32 to vector<256x1xi32>
    %6 = arith.cmpi ne, %4, %5 : vector<256x1xi32>
    %c0_i32_1 = arith.constant 0 : i32
    %7 = vector.broadcast %c0_i32_1 : i32 to vector<256x1xi32>
    %8 = arith.cmpi slt, %4, %7 : vector<256x1xi32>
    %c0_i32_2 = arith.constant 0 : i32
    %9 = arith.cmpi slt, %2, %c0_i32_2 : i32
    %10 = vector.broadcast %9 : i1 to vector<256x1xi1>
    %11 = vector.broadcast %10 : vector<256x1xi1> to vector<256x1xi1>
    %12 = arith.xori %8, %11 : vector<256x1xi1>
    %13 = arith.andi %12, %6 : vector<256x1xi1>
    %14 = vector.broadcast %2 : i32 to vector<256x1xi32>
    %15 = arith.addi %4, %14 : vector<256x1xi32>
    %16 = arith.select %13, %15, %4 : vector<256x1xi1>, vector<256x1xi32>
    %c0_i32_3 = arith.constant 0 : i32
    %17 = vector.broadcast %c0_i32_3 : i32 to vector<256x1xi32>
    %18 = arith.cmpi eq, %16, %17 : vector<256x1xi32>
    %c15_i32 = arith.constant 15 : i32
    %19 = vector.broadcast %c15_i32 : i32 to vector<256x1xi32>
    %20 = arith.cmpi eq, %16, %19 : vector<256x1xi32>
    %c0 = arith.constant 0 : index
    %c0_4 = arith.constant 0 : index
    %21 = vector.load %arg1[%c0, %c0_4] : memref<256x128xf32, #tpu.memory_space<vmem>>, vector<256x128xf32>
    %c1_i32_5 = arith.constant 1 : i32
    %22 = tpu.dynamic_rotate %21 by %c1_i32_5 dim 0 : vector<256x128xf32>, i32 -> vector<256x128xf32>
    %cst = arith.constant 0.000000e+00 : f32
    %23 = vector.shape_cast %18 : vector<256x1xi1> to vector<256x1xi1>
    %24 = vector.broadcast %23 : vector<256x1xi1> to vector<256x128xi1>
    %25 = vector.broadcast %cst : f32 to vector<256x128xf32>
    %26 = arith.select %24, %25, %22 : vector<256x128xi1>, vector<256x128xf32>
    %c255_i32 = arith.constant 255 : i32
    %27 = tpu.dynamic_rotate %21 by %c255_i32 dim 0 : vector<256x128xf32>, i32 -> vector<256x128xf32>
    %cst_6 = arith.constant 0.000000e+00 : f32
    %28 = vector.shape_cast %20 : vector<256x1xi1> to vector<256x1xi1>
    %29 = vector.broadcast %28 : vector<256x1xi1> to vector<256x128xi1>
    %30 = vector.broadcast %cst_6 : f32 to vector<256x128xf32>
    %31 = arith.select %29, %30, %27 : vector<256x128xi1>, vector<256x128xf32>
    %32 = tpu.concatenate %26, %21, %31 in 1 : vector<256x128xf32>, vector<256x128xf32>, vector<256x128xf32> -> vector<256x384xf32>
    %33 = arith.truncf %32 : vector<256x384xf32> to vector<256x384xbf16>
    %c0_7 = arith.constant 0 : index
    %c0_8 = arith.constant 0 : index
    %34 = vector.load %arg2[%c0_7, %c0_8] : memref<384x128xbf16, #tpu.memory_space<vmem>>, vector<384x128xbf16>
    %cst_9 = arith.constant dense<0.000000e+00> : vector<256x128xf32>
    %35 = tpu.matmul %33, %34, %cst_9 {dimension_numbers = #tpu.dot_dimension_numbers<[1], [0], [0], [1], [0, 0, 1, 1], [], []>} : vector<256x384xbf16>, vector<384x128xbf16>, vector<256x128xf32> -> vector<256x128xf32>
    %c0_10 = arith.constant 0 : index
    %c0_11 = arith.constant 0 : index
    %36 = vector.load %arg3[%c0_10, %c0_11] : memref<1x128xf32, #tpu.memory_space<vmem>>, vector<1x128xf32>
    %37 = vector.broadcast %36 : vector<1x128xf32> to vector<256x128xf32>
    %38 = arith.addf %35, %37 : vector<256x128xf32>
    %c1_i32_12 = arith.constant 1 : i32
    %39 = tpu.dynamic_rotate %38 by %c1_i32_12 dim 0 : vector<256x128xf32>, i32 -> vector<256x128xf32>
    %cst_13 = arith.constant 0.000000e+00 : f32
    %40 = vector.shape_cast %18 : vector<256x1xi1> to vector<256x1xi1>
    %41 = vector.broadcast %40 : vector<256x1xi1> to vector<256x128xi1>
    %42 = vector.broadcast %cst_13 : f32 to vector<256x128xf32>
    %43 = arith.select %41, %42, %39 : vector<256x128xi1>, vector<256x128xf32>
    %c255_i32_14 = arith.constant 255 : i32
    %44 = tpu.dynamic_rotate %38 by %c255_i32_14 dim 0 : vector<256x128xf32>, i32 -> vector<256x128xf32>
    %cst_15 = arith.constant 0.000000e+00 : f32
    %45 = vector.shape_cast %20 : vector<256x1xi1> to vector<256x1xi1>
    %46 = vector.broadcast %45 : vector<256x1xi1> to vector<256x128xi1>
    %47 = vector.broadcast %cst_15 : f32 to vector<256x128xf32>
    %48 = arith.select %46, %47, %44 : vector<256x128xi1>, vector<256x128xf32>
    %49 = tpu.concatenate %43, %38, %48 in 1 : vector<256x128xf32>, vector<256x128xf32>, vector<256x128xf32> -> vector<256x384xf32>
    %50 = arith.truncf %49 : vector<256x384xf32> to vector<256x384xbf16>
    %c0_16 = arith.constant 0 : index
    %c0_17 = arith.constant 0 : index
    %51 = vector.load %arg4[%c0_16, %c0_17] : memref<384x128xbf16, #tpu.memory_space<vmem>>, vector<384x128xbf16>
    %cst_18 = arith.constant dense<0.000000e+00> : vector<256x128xf32>
    %52 = tpu.matmul %50, %51, %cst_18 {dimension_numbers = #tpu.dot_dimension_numbers<[1], [0], [0], [1], [0, 0, 1, 1], [], []>} : vector<256x384xbf16>, vector<384x128xbf16>, vector<256x128xf32> -> vector<256x128xf32>
    %c0_19 = arith.constant 0 : index
    %c0_20 = arith.constant 0 : index
    %53 = vector.load %arg5[%c0_19, %c0_20] : memref<1x128xf32, #tpu.memory_space<vmem>>, vector<1x128xf32>
    %54 = vector.broadcast %53 : vector<1x128xf32> to vector<256x128xf32>
    %55 = arith.addf %52, %54 : vector<256x128xf32>
    %c0_21 = arith.constant 0 : index
    %c0_22 = arith.constant 0 : index
    %56 = vector.load %arg6[%c0_21, %c0_22] : memref<256x128xf32, #tpu.memory_space<vmem>>, vector<256x128xf32>
    tpu.vector_store %arg6[%c0_21, %c0_22], %55 {strides = array<i32>} : memref<256x128xf32, #tpu.memory_space<vmem>>, vector<256x128xf32>,
    return
  }
  func.func @transform_0(%arg0: i32) -> (i32, i32) {
    %c0_i32 = arith.constant 0 : i32
    %c0_i32_0 = arith.constant 0 : i32
    return %arg0, %c0_i32 : i32, i32
  }
  func.func @transform_1(%arg0: i32) -> (i32, i32) {
    %c0_i32 = arith.constant 0 : i32
    %c0_i32_0 = arith.constant 0 : i32
    %c0_i32_1 = arith.constant 0 : i32
    return %c0_i32, %c0_i32_0 : i32, i32
  }
  func.func @transform_2(%arg0: i32) -> (i32, i32) {
    %c0_i32 = arith.constant 0 : i32
    %c0_i32_0 = arith.constant 0 : i32
    %c0_i32_1 = arith.constant 0 : i32
    return %c0_i32, %c0_i32_0 : i32, i32
  }
  func.func @transform_3(%arg0: i32) -> (i32, i32) {
    %c0_i32 = arith.constant 0 : i32
    %c0_i32_0 = arith.constant 0 : i32
    %c0_i32_1 = arith.constant 0 : i32
    return %c0_i32, %c0_i32_0 : i32, i32
  }
  func.func @transform_4(%arg0: i32) -> (i32, i32) {
    %c0_i32 = arith.constant 0 : i32
    %c0_i32_0 = arith.constant 0 : i32
    %c0_i32_1 = arith.constant 0 : i32
    return %c0_i32, %c0_i32_0 : i32, i32
  }
  func.func @transform_5(%arg0: i32) -> (i32, i32) {
    %c0_i32 = arith.constant 0 : i32
    %c0_i32_0 = arith.constant 0 : i32
    return %arg0, %c0_i32 : i32, i32
  }
}

</mosaic_0001>

<bundles_post_ra>
// kernel: word_encoder_cnn_batched.1
= control target key start
LH: loop header
LB: loop body
LE: loop exit
PB: predicated region body
PF: predicated region fallthrough
CT: control target
= control target key end

     0   :  { %10 = vsyncpa [#allocation3], 0  ;;  %s4386_s0 = inlined_call_operand.vmem [shape: f32[512,128], index: 0, kind: input, shape index: {}]   ;;  %s4387_s1 = inlined_call_operand.vmem [shape: bf16[384,128], index: 1, kind: input, shape index: {}]   ;;  %s4388_s2 = inlined_call_operand.vmem [shape: f32[1,128], index: 2, kind: input, shape index: {}]   ;;  %s4389_s3 = inlined_call_operand.vmem [shape: bf16[384,128], index: 3, kind: input, shape index: {}]   ;;  %s4390_s4 = inlined_call_operand.vmem [shape: f32[1,128], index: 4, kind: input, shape index: {}]   ;;  %s4391_s5 = inlined_call_operand.hbm [shape: f32[512,128], index: 5, kind: output, shape index: {}]  }
   0x1   :  { %12 = vsyncpa [#allocation3 + $0x1], 0  ;;  %s3083_s18 = smov 0   ;;  %s3085_s19 = smov 0  }
   0x2   :  { %s3087_s20 = smov 0   ;;  %s3089_s21 = smov 0  }
   0x3 LB: > { %s3104_s22 = sadd.s32 4294967295, %s3048_s21   ;;  %s2385_s23 = sadd.s32 4294967294, %s3048_s21   ;;  %s3048_s21 = sphi %s3089_s21, %s4665_s21   ;;  %s3044_s20 = sphi %s3087_s20, %s4664_s20   ;;  %s3040_s19 = sphi %s3085_s19, %s4663_s19   ;;  %s3036_s18 = sphi %s3083_s18, %s4662_s18  }
   0x4   : > { %s3108_s24 = sadd.s32 1, %s3048_s21   ;;  %s135_s25 = sadd.s32 1, %s3044_s20 }
   0x5   : > { %s132_s26 = ssub.s32 %s3048_s21, %s3108_s24  ;;  %p145_p0 = scmp.ne.s32.totalorder %s3044_s20, %s3040_s19 }
   0x6   : > { %p133_p1 = scmp.eq.s32.totalorder %s132_s26, 0  ;;  %p146_p2 = scmp.eq.s32.totalorder %s3104_s22, 1 }
   0x7   : > { %p151_p3 = scmp.ne.s32.totalorder %s3040_s19, %s3036_s18  ;;  %p152_p4 = scmp.eq.s32.totalorder %s2385_s23, 1 }
   0x8   : > { %s3119_s27 = scalar_select %p133_p1, %s3044_s20, %s135_s25  }
   0x9   : > { %p3121_p5 = por %p146_p2, %p145_p0  ;;  %p3125_p6 = por %p152_p4, %p151_p3 }
   0xa   : > { %p2388_p7 = scmp.ge.s32.totalorder %s3048_s21, 1  ;;  %p191_p8 = scmp.lt.s32.totalorder %s3048_s21, 3 }
   0xc   : > { %p192_p9 = pnand %p2388_p7, %p191_p8 }
   0xe   : > { %195 = sbr.rel (%p192_p9) target bundleno = 956 (0x3bc), region = 40 }
  0x13   : > { %v2852_v0 = vld [vmem:[%s4387_s1 + $0x38] sm:$0xff]  ;;  %v2851_v2 = vld [vmem:[%s4387_s1 + $0x30] sm:$0xff]  ;;  %s2390_s13 = sshll.u32 %s3104_s22, 5  ;;  %v2850_v4 = vld [vmem:[%s4387_s1 + $0x28] sm:$0xff]  ;;  %v226_v8 = vlaneseq  ;;  %vm4415_vm2 = vmmov 1   ;;  %v4435_v31 = vmov 0 }
  0x14   : > { %v2860_v1 = vld [vmem:[%s4387_s1 + $0x78] sm:$0xff]  ;;  %2926 = vmatpush.bf16.msra.mxu2 %v2852_v0  ;;  %v2859_v3 = vld [vmem:[%s4387_s1 + $0x70] sm:$0xff]  ;;  %1305 = vmatpush.bf16.msra.mxu0 %v2852_v0  ;;  %p220_p10 = scmp.lt.s32.totalorder %s2390_s13, 63  ;;  %v2858_v5 = vld [vmem:[%s4387_s1 + $0x68] sm:$0xff]  ;;  %v4438_v44 = vmov 0  ;;  %v4441_v56 = vmov 0 }
  0x15   : > { %2934 = vmatpush.bf16.msra.mxu3 %v2860_v1  ;;  %1394 = vmatpush.bf16.msra.mxu1 %v2860_v1  ;;  %v2849_v6 = vld [vmem:[%s4387_s1 + $0x20] sm:$0xff]  ;;  %v2848_v9 = vld [vmem:[%s4387_s1 + $0x18] sm:$0xff]  ;;  %v3162_v11 = vshrl.u32 %v226_v8, 7  ;;  %v2847_v12 = vld [vmem:[%s4387_s1 + $0x10] sm:$0xff]  ;;  %s216_s15 = sand.u32 1, %s3040_s19   ;;  %s2893_s23 = sshll.u32 %s3104_s22, 8 }
  0x16   : > { %s4667_s13 = smov (!%p220_p10, %s2390_s13), 63  ;;  %v2857_v7 = vld [vmem:[%s4387_s1 + $0x60] sm:$0xff]  ;;  %v2856_v10 = vld [vmem:[%s4387_s1 + $0x58] sm:$0xff]  ;;  %v2855_v13 = vld [vmem:[%s4387_s1 + $0x50] sm:$0xff]  ;;  %s2389_s16 = sshll.u32 %s216_s15, 8 }
  0x17   : > { %s2391_s6 = sshll.u32 %s4667_s13, 3  ;;  %v243_v14 = vadd.s32 128, %v3162_v11  ;;  %v2846_v18 = vld [vmem:[%s4387_s1 + $0x8] sm:$0xff]  ;;  %vm4392_vm0 = vcmp.lt.s32.totalorder %v3162_v11, 1  ;;  %v2845_v24 = vld [vmem:[%s4387_s1] sm:$0xff]  ;;  %v2868_v28 = vld [vmem:[%s4387_s1 + $0xb8] sm:$0xff]  ;;  %s2319_s30 = scalar_lea.hbm %s4391_s5, %s2893_s23 }
  0x18   : > { %2927 = vmatpush.bf16.msra.mxu2 %v2851_v2  ;;  %1306 = vmatpush.bf16.msra.mxu0 %v2851_v2  ;;  %s3167_s14 = scalar_lea.vmem %s4386_s0, %s2391_s6  ;;  %v2854_v19 = vld [vmem:[%s4387_s1 + $0x48] sm:$0xff]  ;;  %v2853_v25 = vld [vmem:[%s4387_s1 + $0x40] sm:$0xff]  ;;  %v2867_v32 = vld [vmem:[%s4387_s1 + $0xb0] sm:$0xff]  ;;  %v245_v33 = vadd.s32 144, %v3162_v11  ;;  %v247_v46 = vadd.s32 160, %v3162_v11  ;;  %v249_v58 = vadd.s32 176, %v3162_v11 }
  0x19   : > { %2935 = vmatpush.bf16.msra.mxu3 %v2859_v3  ;;  %1395 = vmatpush.bf16.msra.mxu1 %v2859_v3  ;;  %v3177_v15 = vld [vmem:[%s3167_s14 + $0x78] sm:$0xff]  ;;  %v3180_v16 = vld [vmem:[%s3167_s14 + $0x80] sm:$0xff]  ;;  %v3183_v17 = vld [vmem:[%s3167_s14 + $0x88] sm:$0xff]  ;;  %v375_v23 = vand.u32 15, %v243_v14  ;;  %s4238_s17 = scalar_lea.vmem [#allocation2], %s2389_s16  ;;  %s2322_s7 = sshll.u32 %s2319_s30, 4  ;;  %s2323_s7 = int_to_ptr.hbm [resolvable:$true] %s2322_s7 }
  0x1a   : > { %v4403_v20 = vrot.slane %v3177_v15, 7  ;;  %v755_v21 = vrot.slane %v3180_v16, 7  ;;  %v756_v22 = vrot.slane %v3183_v17, 7  ;;  %v1086_v30 = vpack.c.bf16 %v3183_v17, %v3180_v16  ;;  %v3224_v34 = vld [vmem:[%s3167_s14 + $0x90] sm:$0xff]  ;;  %v3227_v35 = vld [vmem:[%s3167_s14 + $0x98] sm:$0xff]  ;;  %v2866_v36 = vld [vmem:[%s4387_s1 + $0xa8] sm:$0xff] }
  0x1b   : > { %vm2902_vm1 = vcmp.ne.s32.totalorder %v375_v23, 0  ;;  %v757_v37 = vrot.slane %v3224_v34, 7  ;;  %v758_v38 = vrot.slane %v3227_v35, 7  ;;  %v389_v39 = vand.u32 15, %v245_v33  ;;  %v2865_v45 = vld [vmem:[%s4387_s1 + $0xa0] sm:$0xff]  ;;  %v3255_v48 = vld [vmem:[%s3167_s14 + $0xa8] sm:$0xff] }
  0x1c   : > { %2928 = vmatpush.bf16.msra.mxu2 %v2850_v4  ;;  %1307 = vmatpush.bf16.msra.mxu0 %v2850_v4  ;;  %v786_v26 = vsel %vm4392_vm0, %v755_v21, %v756_v22  ;;  %v787_v27 = vsel %vm4392_vm0, %v4403_v20, %v755_v21  ;;  %vm3213_vm3 = vmpackc.low %vm4415_vm2, %vm2902_vm1  ;;  %v1089_v43 = vpack.c.bf16 %v3227_v35, %v3224_v34  ;;  %v3252_v47 = vld [vmem:[%s3167_s14 + $0xa0] sm:$0xff]  ;;  %v760_v50 = vrot.slane %v3255_v48, 7  ;;  %v2864_v57 = vld [vmem:[%s4387_s1 + $0x98] sm:$0xff]  ;;  %s2320_s6 = sshll.u32 %s4238_s17, 4  ;;  %s2308_s22 = scalar_lea.sflag [#allocation3], %s216_s15  ;;  %s2321_s6 = int_to_ptr.vmem [resolvable:$true] %s2320_s6 }
  0x1d   : > { %2936 = vmatpush.bf16.msra.mxu3 %v2858_v5  ;;  %1396 = vmatpush.bf16.msra.mxu1 %v2858_v5  ;;  %v2522_v29 = vpack.c.bf16 %v786_v26, %v787_v27  ;;  %v4436_v31 = vsel %vm3213_vm3, 4294967295, %v4435_v31  ;;  %v784_v40 = vsel %vm4392_vm0, %v757_v37, %v758_v38  ;;  %v785_v41 = vsel %vm4392_vm0, %v756_v22, %v757_v37  ;;  %v3277_v59 = vld [vmem:[%s3167_s14 + $0xb0] sm:$0xff]  ;;  %v3280_v60 = vld [vmem:[%s3167_s14 + $0xb8] sm:$0xff]  ;;  %v3305_v8 = vld [vmem:[%s3167_s14 + $0xc8] sm:$0xff]  ;;  %s3000_s8 = sshra.s32 %s2323_s7, 4  ;;  %s3006_s12 = scalar_lea.hbm %s4391_s5, 512  ;;  %s3001_s8 = int_to_ptr.hbm [resolvable:$true] %s3000_s8 }
  0x1e   : > { %4437 = vst [vmem:[#allocation5_spill] sm:$0xff] %v4436_v31  ;;  %vm2903_vm4 = vcmp.ne.s32.totalorder %v389_v39, 0  ;;  %v2526_v42 = vpack.c.bf16 %v784_v40, %v785_v41  ;;  %v759_v49 = vrot.slane %v3252_v47, 7  ;;  %v403_v51 = vand.u32 15, %v247_v46  ;;  %v2863_v5 = vld [vmem:[%s4387_s1 + $0x90] sm:$0xff]  ;;  %v2862_v22 = vld [vmem:[%s4387_s1 + $0x88] sm:$0xff]  ;;  %p3007_p0 = scmp.lt.s32.totalorder %s3001_s8, %s4391_s5 }
  0x1f   : > { %vm3241_vm5 = vmpackc.low %vm4415_vm2, %vm2903_vm4  ;;  %v1092_v55 = vpack.c.bf16 %v3255_v48, %v3252_v47  ;;  %v761_v61 = vrot.slane %v3277_v59, 7  ;;  %v762_v62 = vrot.slane %v3280_v60, 7  ;;  %v417_v63 = vand.u32 15, %v249_v58  ;;  %v2861_v37 = vld [vmem:[%s4387_s1 + $0x80] sm:$0xff]  ;;  %v3355_v40 = vld [vmem:[%s3167_s14 + $0xe8] sm:$0xff]  ;;  %s3002_s9 = scalar_lea.hbm %s3001_s8, 256 }
  0x20   : > { %2929 = vmatpush.bf16.msra.mxu2 %v2849_v6  ;;  %1308 = vmatpush.bf16.msra.mxu0 %v2849_v6  ;;  %v4439_v44 = vsel %vm3241_vm5, 4294967295, %v4438_v44  ;;  %v782_v52 = vsel %vm4392_vm0, %v759_v49, %v760_v50  ;;  %v783_v53 = vsel %vm4392_vm0, %v758_v38, %v759_v49  ;;  %vm2904_vm6 = vcmp.ne.s32.totalorder %v403_v51, 0  ;;  %v3352_v39 = vld [vmem:[%s3167_s14 + $0xe0] sm:$0xff]  ;;  %v3364_v49 = vld [vmem:[%s3167_s14 + $0xf8] sm:$0xff]  ;;  %v721_v20 = vld [vmem:[%s3167_s14 + $0x70] sm:$0xff]  ;;  %p3003_p11 = scmp.ne.s32.totalorder %s3001_s8, %s3002_s9  ;;  %p3008_p1 = scmp.lt.s32.totalorder %s3006_s12, %s3002_s9 }
  0x21   : > { %2937 = vmatpush.bf16.msra.mxu3 %v2857_v7  ;;  %1397 = vmatpush.bf16.msra.mxu1 %v2857_v7  ;;  %4440 = vst [vmem:[#allocation6_spill] sm:$0xff] %v4439_v44  ;;  %v2530_v54 = vpack.c.bf16 %v782_v52, %v783_v53  ;;  %vm3266_vm7 = vmpackc.low %vm4415_vm2, %vm2904_vm6  ;;  %v780_v0 = vsel %vm4392_vm0, %v761_v61, %v762_v62  ;;  %vm2905_vm8 = vcmp.ne.s32.totalorder %v417_v63, 0  ;;  %v4444_v4 = vmov 0  ;;  %v3302_v7 = vld [vmem:[%s3167_s14 + $0xc0] sm:$0xff]  ;;  %v708_v53 = vld [vmem:[%s3167_s14 + $0x8] sm:$0xff] }
  0x22   : > { %v4442_v56 = vsel %vm3266_vm7, 4294967295, %v4441_v56  ;;  %v781_v1 = vsel %vm4392_vm0, %v760_v50, %v761_v61  ;;  %v1095_v3 = vpack.c.bf16 %v3280_v60, %v3277_v59  ;;  %vm3291_vm9 = vmpackc.low %vm4415_vm2, %vm2905_vm8  ;;  %v251_v6 = vadd.s32 192, %v3162_v11  ;;  %v3369_v52 = vld [vmem:[%s3167_s14] sm:$0xff]  ;;  %p3004_p12 = pnand %p3003_p11, %p3121_p5  ;;  %p3009_p2 = por %p3008_p1, %p3007_p0 }
  0x23   : > { %4443 = vst [vmem:[#allocation7_spill] sm:$0xff] %v4442_v56  ;;  %v2534_v2 = vpack.c.bf16 %v780_v0, %v781_v1  ;;  %v4445_v4 = vsel %vm3291_vm9, 4294967295, %v4444_v4  ;;  %v4447_v21 = vmov 0  ;;  %v253_v23 = vadd.s32 208, %v3162_v11 }
  0x24   : > { %2930 = vmatpush.bf16.msra.mxu2 %v2848_v9  ;;  %1309 = vmatpush.bf16.msra.mxu0 %v2848_v9  ;;  %4446 = vst [vmem:[#allocation8_spill] sm:$0xff] %v4445_v4  ;;  %v763_v9 = vrot.slane %v3302_v7, 7  ;;  %v255_v38 = vadd.s32 224, %v3162_v11  ;;  %v767_v41 = vrot.slane %v3352_v39, 7  ;;  %v1104_v51 = vpack.c.bf16 %v3355_v40, %v3352_v39  ;;  %p3005_p13 = pneg %p3004_p12 }
  0x25   : > { %2938 = vmatpush.bf16.msra.mxu3 %v2856_v10  ;;  %1398 = vmatpush.bf16.msra.mxu1 %v2856_v10  ;;  %v764_v10 = vrot.slane %v3305_v8, 7  ;;  %v740_v58 = vrot.slane %v708_v53, 7  ;;  %v263_v61 = vand.u32 15, %v3162_v11  ;;  %v4456_v1 = vmov 0 }
  0x26   : > { %v779_v14 = vsel %vm4392_vm0, %v762_v62, %v763_v9  ;;  %p3010_p3 = pnand %p3009_p2, %p3005_p13 }
  0x27   : > { %vm2894_vm1 = vcmp.ne.s32.totalorder %v263_v61, 0 }
  0x28   : > { %2931 = vmatpush.bf16.msra.mxu2 %v2847_v12  ;;  %1310 = vmatpush.bf16.msra.mxu0 %v2847_v12  ;;  %v431_v12 = vand.u32 15, %v251_v6  ;;  %vm3387_vm4 = vmpackc.low %vm4415_vm2, %vm2894_vm1 }
  0x29   : > { %2939 = vmatpush.bf16.msra.mxu3 %v2855_v13  ;;  %1399 = vmatpush.bf16.msra.mxu1 %v2855_v13  ;;  %v778_v13 = vsel %vm4392_vm0, %v763_v9, %v764_v10  ;;  %v4457_v1 = vsel %vm3387_vm4, 4294967295, %v4456_v1 }
  0x2a   : > { %vm2906_vm10 = vcmp.ne.s32.totalorder %v431_v12, 0  ;;  %4458 = vst [vmem:[#allocation12_spill] sm:$0xff] %v4457_v1 }
  0x2b   : > { %vm3316_vm11 = vmpackc.low %vm4415_vm2, %vm2906_vm10 }
  0x2c   : > { %2932 = vmatpush.bf16.msra.mxu2 %v2846_v18  ;;  %1311 = vmatpush.bf16.msra.mxu0 %v2846_v18  ;;  %v2538_v18 = vpack.c.bf16 %v778_v13, %v779_v14  ;;  %v4448_v21 = vsel %vm3316_vm11, 4294967295, %v4447_v21 }
  0x2d   : > { %2940 = vmatpush.bf16.msra.mxu3 %v2854_v19  ;;  %1400 = vmatpush.bf16.msra.mxu1 %v2854_v19  ;;  %v1098_v19 = vpack.c.bf16 %v3305_v8, %v3302_v7  ;;  %4449 = vst [vmem:[#allocation9_spill] sm:$0xff] %v4448_v21 }
  0x30   : > { %2933 = vmatpush.bf16.msra.mxu2 %v2845_v24  ;;  %1312 = vmatpush.bf16.msra.mxu0 %v2845_v24  ;;  %v3327_v24 = vld [vmem:[%s3167_s14 + $0xd0] sm:$0xff] }
  0x31   : > { %2941 = vmatpush.bf16.msra.mxu3 %v2853_v25  ;;  %1401 = vmatpush.bf16.msra.mxu1 %v2853_v25  ;;  %v3330_v25 = vld [vmem:[%s3167_s14 + $0xd8] sm:$0xff]  ;;  %v765_v26 = vrot.slane %v3327_v24, 7 }
  0x32   : > { %v766_v27 = vrot.slane %v3330_v25, 7  ;;  %v1101_v33 = vpack.c.bf16 %v3330_v25, %v3327_v24 }
  0x33   : > { %2523 = vmatmul.msk.bf16.vlgmr.msra.gmra.mxu2 %vm3213_vm3, %v2522_v29 }
  0x34   : > { %1483 = vmatpush.bf16.msrb.mxu2 %v2868_v28  ;;  %1442 = vmatmul.bf16.vlgmr.msra.gmra.mxu3 %v1086_v30  ;;  %v445_v28 = vand.u32 15, %v253_v23  ;;  %v776_v29 = vsel %vm4392_vm0, %v765_v26, %v766_v27  ;;  %v777_v30 = vsel %vm4392_vm0, %v764_v10, %v765_v26  ;;  %v775_v46 = vsel %vm4392_vm0, %v766_v27, %v767_v41 }
  0x35   : > { %v4459_v23 = vmov 0 }
  0x36   : > { %vm2907_vm12 = vcmp.ne.s32.totalorder %v445_v28, 0 }
  0x37   : > { %vm3341_vm13 = vmpackc.low %vm4415_vm2, %vm2907_vm12 }
  0x38   : > { %1484 = vmatpush.bf16.msrb.mxu2 %v2867_v32  ;;  %v2542_v32 = vpack.c.bf16 %v776_v29, %v777_v30 }
  0x3c   : > { %1485 = vmatpush.bf16.msrb.mxu2 %v2866_v36  ;;  %v4450_v36 = vmov 0 }
  0x3d   : > { %v4451_v36 = vsel %vm3341_vm13, 4294967295, %v4450_v36 }
  0x3e   : > { %4452 = vst [vmem:[#allocation10_spill] sm:$0xff] %v4451_v36 }
  0x40   : > { %1486 = vmatpush.bf16.msrb.mxu2 %v2865_v45 }
  0x43   : > { %2527 = vmatmul.msk.bf16.gmra.mxu2 %vm3241_vm5, %v2526_v42  ;;  %v768_v42 = vrot.slane %v3355_v40, 7 }
  0x44   : > { %1447 = vmatmul.bf16.gmra.mxu3 %v1089_v43  ;;  %1487 = vmatpush.bf16.msrb.mxu2 %v2864_v57  ;;  %v459_v43 = vand.u32 15, %v255_v38  ;;  %v739_v57 = vrot.slane %v3369_v52, 7 }
  0x45   : > { %v774_v45 = vsel %vm4392_vm0, %v767_v41, %v768_v42  ;;  %v4402_v41 = vrot.slane %v3369_v52, 1 }
  0x46   : > { %vm2908_vm14 = vcmp.ne.s32.totalorder %v459_v43, 0  ;;  %v2546_v50 = vpack.c.bf16 %v774_v45, %v775_v46  ;;  %v802_v62 = vsel %vm4392_vm0, %v739_v57, %v740_v58 }
  0x47   : > { %vm3373_vm15 = vmpackc.low %vm4415_vm2, %vm2908_vm14  ;;  %vm4394_vm14 = vcmp.lt.s32.totalorder %v3162_v11, 7 }
  0x48   : > { %1488 = vmatpush.bf16.msrb.mxu2 %v2863_v5  ;;  %v1062_v5 = vpack.c.bf16 %v708_v53, %v3369_v52 }
  0x4a   : > { %1402 = vmatmul.bf16.vlgmr.msra.gmra.mxu1 %v1062_v5 }
  0x4c   : > { %1489 = vmatpush.bf16.msrb.mxu2 %v2862_v22  ;;  %v229_v22 = vadd.s32 16, %v3162_v11 }
  0x4e   : > { %v277_v28 = vand.u32 15, %v229_v22 }
  0x50   : > { %1490 = vmatpush.bf16.msrb.mxu2 %v2861_v37  ;;  %vm2895_vm10 = vcmp.ne.s32.totalorder %v277_v28, 0  ;;  %v228_v37 = vadd.s32 8, %v3162_v11 }
  0x51   : > { %vm3420_vm12 = vmpackc.low %vm4415_vm2, %vm2895_vm10 }
  0x52   : > { %v270_v45 = vand.u32 15, %v228_v37 }
  0x53   : > { %2531 = vmatmul.msk.bf16.gmra.mxu2 %vm3266_vm7, %v2530_v54  ;;  %v4453_v54 = vmov 0 }
  0x54   : > { %1452 = vmatmul.bf16.gmra.mxu3 %v1092_v55  ;;  %v4454_v54 = vsel %vm3373_vm15, 4294967295, %v4453_v54  ;;  %v770_v55 = vrot.slane %v3364_v49, 7  ;;  %vm2910_vm1 = vcmp.ne.s32.totalorder %v270_v45, 15 }
  0x55   : > { %4455 = vst [vmem:[#allocation11_spill] sm:$0xff] %v4454_v54  ;;  %v2878_v54 = vld [vmem:[%s4389_s3 + $0x48] sm:$0xff] }
  0x56   : > { %v803_v63 = vsel %vm4392_vm0, %v770_v55, %v739_v57  ;;  %v712_v57 = vld [vmem:[%s3167_s14 + $0x28] sm:$0xff] }
  0x57   : > { %v2490_v0 = vpack.c.bf16 %v802_v62, %v803_v63  ;;  %v744_v62 = vrot.slane %v712_v57, 7 }
  0x59   : > { %2491 = vmatmul.msk.bf16.vlgmr.msra.gmra.mxu0 %vm3387_vm4, %v2490_v0 }
  0x63   : > { %2535 = vmatmul.msk.bf16.gmra.mxu2 %vm3291_vm9, %v2534_v2  ;;  %v257_v2 = vadd.s32 240, %v3162_v11 }
  0x64   : > { %1457 = vmatmul.bf16.gmra.mxu3 %v1095_v3  ;;  %v3393_v3 = vld [vmem:[%s3167_s14 + $0xf0] sm:$0xff] }
  0x65   : > { %v769_v6 = vrot.slane %v3393_v3, 7  ;;  %v473_v9 = vand.u32 15, %v257_v2  ;;  %v1107_v14 = vpack.c.bf16 %v3364_v49, %v3393_v3 }
  0x67   : > { %v772_v10 = vsel %vm4392_vm0, %v769_v6, %v770_v55  ;;  %v773_v12 = vsel %vm4392_vm0, %v768_v42, %v769_v6  ;;  %vm2909_vm6 = vcmp.ne.s32.totalorder %v473_v9, 0  ;;  %v901_v42 = vrot.slane %v708_v53, 1  ;;  %v711_v55 = vld [vmem:[%s3167_s14 + $0x20] sm:$0xff] }
  0x68   : > { %v2550_v13 = vpack.c.bf16 %v772_v10, %v773_v12  ;;  %vm3409_vm8 = vmpackc.low %vm4415_vm2, %vm2909_vm6  ;;  %v743_v61 = vrot.slane %v711_v55, 7  ;;  %v4467_v6 = vmov 0  ;;  %v230_v9 = vadd.s32 24, %v3162_v11 }
  0x69   : > { %v4460_v23 = vsel %vm3409_vm8, 4294967295, %v4459_v23  ;;  %vm3439_vm6 = vmpackc.low %vm2910_vm1, %vm4415_vm2  ;;  %v1068_v10 = vpack.c.bf16 %v712_v57, %v711_v55 }
  0x6a   : > { %4461 = vst [vmem:[#allocation13_spill] sm:$0xff] %v4460_v23  ;;  %v798_v0 = vsel %vm4392_vm0, %v743_v61, %v744_v62 }
  0x73   : > { %2539 = vmatmul.msk.bf16.gmra.mxu2 %vm3316_vm11, %v2538_v18  ;;  %v709_v18 = vld [vmem:[%s3167_s14 + $0x10] sm:$0xff] }
  0x74   : > { %1462 = vmatmul.bf16.gmra.mxu3 %v1098_v19  ;;  %v710_v19 = vld [vmem:[%s3167_s14 + $0x18] sm:$0xff]  ;;  %v741_v26 = vrot.slane %v709_v18, 7  ;;  %v902_v43 = vrot.slane %v709_v18, 1 }
  0x75   : > { %v742_v27 = vrot.slane %v710_v19, 7  ;;  %v1065_v38 = vpack.c.bf16 %v710_v19, %v709_v18  ;;  %v284_v18 = vand.u32 15, %v230_v9 }
  0x76   : > { %v801_v30 = vsel %vm4392_vm0, %v740_v58, %v741_v26  ;;  %v962_v46 = vsel %vm4394_vm14, %v901_v42, %v902_v43  ;;  %v231_v58 = vadd.s32 32, %v3162_v11 }
  0x77   : > { %v800_v29 = vsel %vm4392_vm0, %v741_v26, %v742_v27  ;;  %1407 = vmatmul.bf16.gmra.mxu1 %v1065_v38  ;;  %v799_v2 = vsel %vm4392_vm0, %v742_v27, %v743_v61  ;;  %v905_v61 = vrot.slane %v712_v57, 1 }
  0x78   : > { %v291_v63 = vand.u32 15, %v231_v58  ;;  %v2498_v5 = vpack.c.bf16 %v798_v0, %v799_v2 }
  0x7a   : > { %vm2896_vm10 = vcmp.ne.s32.totalorder %v291_v63, 0 }
  0x7b   : > { %vm3450_vm1 = vmpackc.low %vm4415_vm2, %vm2896_vm10  ;;  %vm2911_vm10 = vcmp.ne.s32.totalorder %v284_v18, 15  ;;  %v235_v18 = vadd.s32 64, %v3162_v11 }
  0x7c   : > { %v4468_v6 = vsel %vm3450_vm1, 4294967295, %v4467_v6  ;;  %vm3469_vm0 = vmpackc.low %vm2911_vm10, %vm4415_vm2 }
  0x7d   : > { %4469 = vst [vmem:[#allocation15_spill] sm:$0xff] %v4468_v6 }
  0x83   : > { %2543 = vmatmul.msk.bf16.gmra.mxu2 %vm3341_vm13, %v2542_v32  ;;  %v2494_v32 = vpack.c.bf16 %v800_v29, %v801_v30  ;;  %v713_v29 = vld [vmem:[%s3167_s14 + $0x30] sm:$0xff]  ;;  %v714_v30 = vld [vmem:[%s3167_s14 + $0x38] sm:$0xff] }
  0x84   : > { %1467 = vmatmul.bf16.gmra.mxu3 %v1101_v33  ;;  %v4462_v33 = vmov 0  ;;  %v746_v38 = vrot.slane %v714_v30, 7 }
  0x85   : > { %v4463_v33 = vsel %vm3420_vm12, 4294967295, %v4462_v33  ;;  %2495 = vmatmul.msk.bf16.gmra.mxu0 %vm3420_vm12, %v2494_v32  ;;  %v233_v32 = vadd.s32 48, %v3162_v11 }
  0x86   : > { %4464 = vst [vmem:[#allocation14_spill] sm:$0xff] %v4463_v33 }
  0x87   : > { %1412 = vmatmul.bf16.gmra.mxu1 %v1068_v10  ;;  %v715_v10 = vld [vmem:[%s3167_s14 + $0x40] sm:$0xff] }
  0x88   : > { %v747_v57 = vrot.slane %v715_v10, 7 }
  0x93   : > { %2547 = vmatmul.msk.bf16.gmra.mxu2 %vm3373_vm15, %v2546_v50  ;;  %v963_v50 = vsel %vm4394_vm14, %v4402_v41, %v901_v42  ;;  %v305_v42 = vand.u32 15, %v233_v32 }
  0x94   : > { %1472 = vmatmul.bf16.gmra.mxu3 %v1104_v51  ;;  %v2554_v51 = vpack.c.bf16 %v962_v46, %v963_v50  ;;  %v4474_v50 = vmov 0 }
  0x95   : > { %2499 = vmatmul.msk.bf16.gmra.mxu0 %vm3450_vm1, %v2498_v5  ;;  %vm2897_vm15 = vcmp.ne.s32.totalorder %v305_v42, 0  ;;  %v234_v42 = vadd.s32 56, %v3162_v11 }
  0x96   : > { %vm3480_vm10 = vmpackc.low %vm4415_vm2, %vm2897_vm15 }
  0x97   : > { %v4475_v50 = vsel %vm3480_vm10, 4294967295, %v4474_v50 }
  0x98   : > { %4476 = vst [vmem:[#allocation16_spill] sm:$0xff] %v4475_v50 }
  0xa3   : > { %2551 = vmatmul.msk.bf16.gmra.mxu2 %vm3409_vm8, %v2550_v13  ;;  %v903_v13 = vrot.slane %v710_v19, 1  ;;  %v745_v19 = vrot.slane %v713_v29, 7  ;;  %vm4472_vm8 = vcmp.lt.s32.totalorder %v3162_v11, 1 }
  0xa4   : > { %1477 = vmatmul.bf16.gmra.mxu3 %v1107_v14  ;;  %v904_v14 = vrot.slane %v711_v55, 1  ;;  %v1071_v55 = vpack.c.bf16 %v714_v30, %v713_v29 }
  0xa5   : > { %v961_v26 = vsel %vm4394_vm14, %v902_v43, %v903_v13  ;;  %v796_v45 = vsel %vm4472_vm8, %v745_v19, %v746_v38 }
  0xa6   : > { %v960_v22 = vsel %vm4394_vm14, %v903_v13, %v904_v14  ;;  %vm4473_vm14 = vmmov %vm4472_vm8  ;;  %1417 = vmatmul.bf16.gmra.mxu1 %v1071_v55  ;;  %vm4477_vm8 = vcmp.lt.s32.totalorder %v3162_v11, 7  ;;  %v716_v13 = vld [vmem:[%s3167_s14 + $0x48] sm:$0xff] }
  0xa7   : > { %v2558_v28 = vpack.c.bf16 %v960_v22, %v961_v26  ;;  %v797_v43 = vsel %vm4473_vm14, %v744_v62, %v745_v19  ;;  %v906_v62 = vrot.slane %v713_v29, 1  ;;  %vm4478_vm15 = vmmov %vm4477_vm8  ;;  %v748_v26 = vrot.slane %v716_v13, 7 }
  0xa8   : > { %v2502_v46 = vpack.c.bf16 %v796_v45, %v797_v43  ;;  %v959_v2 = vsel %vm4478_vm15, %v904_v14, %v905_v61  ;;  %v4483_v19 = vmov 0  ;;  %v1074_v45 = vpack.c.bf16 %v716_v13, %v715_v10 }
  0xa9   : > { %v958_v0 = vsel %vm4477_vm8, %v905_v61, %v906_v62  ;;  %vm4481_vm8 = vcmp.lt.s32.totalorder %v3162_v11, 1 }
  0xaa   : > { %2503 = vmatmul.msk.bf16.gmra.mxu0 %vm3480_vm10, %v2502_v46  ;;  %v2562_v9 = vpack.c.bf16 %v958_v0, %v959_v2  ;;  %v794_v29 = vsel %vm4481_vm8, %v747_v57, %v748_v26  ;;  %vm4482_vm15 = vmmov %vm4481_vm8  ;;  %v908_v46 = vrot.slane %v715_v10, 1  ;;  %vm4486_vm8 = vcmp.lt.s32.totalorder %v3162_v11, 7  ;;  %v717_v2 = vld [vmem:[%s3167_s14 + $0x50] sm:$0xff] }
  0xab   : > { %v795_v14 = vsel %vm4482_vm15, %v746_v38, %v747_v57  ;;  %v907_v38 = vrot.slane %v714_v30, 1  ;;  %v749_v30 = vrot.slane %v717_v2, 7 }
  0xac   : > { %v2506_v32 = vpack.c.bf16 %v794_v29, %v795_v14 }
  0xad   : > { %v956_v55 = vsel %vm4486_vm8, %v907_v38, %v908_v46 }
  0xb3   : > { %2555 = vmatmul.msk.bf16.vlgmr.msrb.gmra.mxu2 %vm3439_vm6, %v2554_v51  ;;  %v232_v51 = vadd.s32 40, %v3162_v11 }
  0xb5   : > { %v298_v63 = vand.u32 15, %v232_v51  ;;  %v312_v51 = vand.u32 15, %v234_v42  ;;  %v236_v42 = vadd.s32 72, %v3162_v11 }
  0xb6   : > { %v3457_v12 = vpop.f32.mrf.mxu2  ;;  %1422 = vmatmul.bf16.gmra.mxu1 %v1074_v45 }
  0xb7   : > { %vm2912_vm14 = vcmp.ne.s32.totalorder %v298_v63, 15  ;;  %vm2913_vm15 = vcmp.ne.s32.totalorder %v312_v51, 15  ;;  %v910_v51 = vrot.slane %v717_v2, 1 }
  0xb8   : > { %vm3499_vm13 = vmpackc.low %vm2912_vm14, %vm4415_vm2 }
  0xb9   : > { %vm3529_vm9 = vmpackc.low %vm2913_vm15, %vm4415_vm2 }
  0xbe   : > { %v3463_v27 = vpop.f32.mrf.mxu2 }
  0xc3   : > { %2559 = vmatmul.msk.bf16.gmra.mxu2 %vm3469_vm0, %v2558_v28  ;;  %v319_v28 = vand.u32 15, %v235_v18  ;;  %v237_v18 = vadd.s32 80, %v3162_v11 }
  0xc5   : > { %vm2898_vm11 = vcmp.ne.s32.totalorder %v319_v28, 0  ;;  %v333_v28 = vand.u32 15, %v237_v18 }
  0xc6   : > { %v3487_v58 = vpop.f32.mrf.mxu2  ;;  %vm3510_vm14 = vmpackc.low %vm4415_vm2, %vm2898_vm11 }
  0xc7   : > { %v4484_v19 = vsel %vm3510_vm14, 4294967295, %v4483_v19  ;;  %2507 = vmatmul.msk.bf16.gmra.mxu0 %vm3510_vm14, %v2506_v32  ;;  %vm4487_vm11 = vmmov %vm4486_vm8  ;;  %vm4490_vm8 = vcmp.lt.s32.totalorder %v3162_v11, 1  ;;  %vm2899_vm7 = vcmp.ne.s32.totalorder %v333_v28, 0  ;;  %v4492_v32 = vmov 0  ;;  %v719_v28 = vld [vmem:[%s3167_s14 + $0x60] sm:$0xff] }
  0xc8   : > { %4485 = vst [vmem:[#allocation17_spill] sm:$0xff] %v4484_v19  ;;  %v957_v61 = vsel %vm4487_vm11, %v906_v62, %v907_v38  ;;  %vm4491_vm11 = vmmov %vm4490_vm8  ;;  %vm4523_vm14 = vmmov 1  }
  0xc9   : > { %v2566_v0 = vpack.c.bf16 %v956_v55, %v957_v61  ;;  %v793_v62 = vsel %vm4491_vm11, %v748_v26, %v749_v30  ;;  %vm3540_vm15 = vmpackc.low %vm4415_vm2, %vm2899_vm7  ;;  %v909_v26 = vrot.slane %v716_v13, 1  ;;  %v326_v55 = vand.u32 15, %v236_v42 }
  0xca   : > { %v4493_v32 = vsel %vm3540_vm15, 4294967295, %v4492_v32  ;;  %v751_v13 = vrot.slane %v719_v28, 7 }
  0xcb   : > { %4494 = vst [vmem:[#allocation18_spill] sm:$0xff] %v4493_v32  ;;  %vm2914_vm11 = vcmp.ne.s32.totalorder %v326_v55, 15  ;;  %v4501_v55 = vmov 0 }
  0xcc   : > { %vm3559_vm5 = vmpackc.low %vm2914_vm11, %vm4415_vm2 }
  0xce   : > { %v3493_v5 = vpop.f32.mrf.mxu2 }
  0xd3   : > { %2563 = vmatmul.msk.bf16.gmra.mxu2 %vm3499_vm13, %v2562_v9  ;;  %v718_v9 = vld [vmem:[%s3167_s14 + $0x58] sm:$0xff] }
  0xd4   : > { %v750_v10 = vrot.slane %v718_v9, 7  ;;  %v1077_v45 = vpack.c.bf16 %v718_v9, %v717_v2 }
  0xd6   : > { %v3517_v43 = vpop.f32.mrf.mxu2  ;;  %v792_v29 = vsel %vm4490_vm8, %v749_v30, %v750_v10  ;;  %1427 = vmatmul.bf16.gmra.mxu1 %v1077_v45  ;;  %vm4495_vm8 = vcmp.lt.s32.totalorder %v3162_v11, 7 }
  0xd7   : > { %v2510_v14 = vpack.c.bf16 %v792_v29, %v793_v62  ;;  %v954_v61 = vsel %vm4495_vm8, %v909_v26, %v910_v51  ;;  %vm4496_vm7 = vmmov %vm4495_vm8  ;;  %v720_v29 = vld [vmem:[%s3167_s14 + $0x68] sm:$0xff]  ;;  %v239_v62 = vadd.s32 96, %v3162_v11  ;;  %vm4499_vm8 = vcmp.lt.s32.totalorder %v3162_v11, 1 }
  0xd8   : > { %v752_v2 = vrot.slane %v720_v29, 7 }
  0xd9   : > { %2511 = vmatmul.msk.bf16.gmra.mxu0 %vm3540_vm15, %v2510_v14  ;;  %v347_v42 = vand.u32 15, %v239_v62 }
  0xda   : > { %v790_v45 = vsel %vm4499_vm8, %v751_v13, %v752_v2 }
  0xdb   : > { %vm2900_vm3 = vcmp.ne.s32.totalorder %v347_v42, 0 }
  0xdc   : > { %vm3570_vm11 = vmpackc.low %vm4415_vm2, %vm2900_vm3 }
  0xdd   : > { %v4502_v55 = vsel %vm3570_vm11, 4294967295, %v4501_v55 }
  0xde   : > { %v3523_v63 = vpop.f32.mrf.mxu2  ;;  %4503 = vst [vmem:[#allocation19_spill] sm:$0xff] %v4502_v55  ;;  %v920_v55 = vrot.slane %v3252_v47, 1  ;;  %v4528_v47 = vmov 0 }
  0xe3   : > { %2567 = vmatmul.msk.bf16.gmra.mxu2 %vm3529_vm9, %v2566_v0  ;;  %v955_v0 = vsel %vm4496_vm7, %v908_v46, %v909_v26  ;;  %vm4500_vm7 = vmmov %vm4499_vm8  ;;  %vm4504_vm8 = vcmp.lt.s32.totalorder %v3162_v11, 7 }
  0xe4   : > { %v2570_v30 = vpack.c.bf16 %v954_v61, %v955_v0  ;;  %v791_v46 = vsel %vm4500_vm7, %v750_v10, %v751_v13  ;;  %v238_v61 = vadd.s32 88, %v3162_v11  ;;  %v1080_v0 = vpack.c.bf16 %v720_v29, %v719_v28  ;;  %vm4505_vm3 = vmmov %vm4504_vm8 }
  0xe5   : > { %v2514_v26 = vpack.c.bf16 %v790_v45, %v791_v46  ;;  %v911_v10 = vrot.slane %v718_v9, 1  ;;  %v912_v13 = vrot.slane %v719_v28, 1  ;;  %v753_v9 = vrot.slane %v721_v20, 7 }
  0xe6   : > { %v3547_v38 = vpop.f32.mrf.mxu2  ;;  %1432 = vmatmul.bf16.gmra.mxu1 %v1080_v0 }
  0xe7   : > { %v952_v42 = vsel %vm4504_vm8, %v911_v10, %v912_v13  ;;  %v953_v45 = vsel %vm4505_vm3, %v910_v51, %v911_v10  ;;  %v4508_v51 = vrot.slane %v3177_v15, 7  ;;  %vm4509_vm8 = vcmp.lt.s32.totalorder %v3162_v11, 1 }
  0xe8   : > { %v2574_v41 = vpack.c.bf16 %v952_v42, %v953_v45  ;;  %vm4510_vm3 = vmmov %vm4509_vm8  ;;  %v4511_v42 = vmov 0  ;;  %v240_v45 = vadd.s32 104, %v3162_v11 }
  0xe9   : > { %2515 = vmatmul.msk.bf16.gmra.mxu0 %vm3570_vm11, %v2514_v26  ;;  %v241_v26 = vadd.s32 112, %v3162_v11  ;;  %v788_v0 = vsel %vm4509_vm8, %v753_v9, %v4508_v51  ;;  %v789_v10 = vsel %vm4510_vm3, %v752_v2, %v753_v9  ;;  %v913_v2 = vrot.slane %v720_v29, 1 }
  0xea   : > { %v914_v9 = vrot.slane %v721_v20, 1  ;;  %vm4514_vm8 = vcmp.lt.s32.totalorder %v3162_v11, 7 }
  0xeb   : > { %v361_v28 = vand.u32 15, %v241_v26  ;;  %v1083_v26 = vpack.c.bf16 %v3177_v15, %v721_v20  ;;  %vm4515_vm3 = vmmov %vm4514_vm8  ;;  %v2881_v20 = vld [vmem:[%s4389_s3 + $0x60] sm:$0xff] }
  0xee   : > { %v3553_v18 = vpop.f32.mrf.mxu2 }
  0xf3   : > { %2571 = vmatmul.msk.bf16.gmra.mxu2 %vm3559_vm5, %v2570_v30  ;;  %v340_v30 = vand.u32 15, %v238_v61  ;;  %v2884_v61 = vld [vmem:[%s4389_s3 + $0x78] sm:$0xff] }
  0xf4   : > { %2097 = vmatpush.bf16.msrb.mxu0 %v2884_v61  ;;  %v2882_v61 = vld [vmem:[%s4389_s3 + $0x68] sm:$0xff] }
  0xf5   : > { %vm2915_vm7 = vcmp.ne.s32.totalorder %v340_v30, 15  ;;  %v2518_v30 = vpack.c.bf16 %v788_v0, %v789_v10  ;;  %v950_v0 = vsel %vm4514_vm8, %v913_v2, %v914_v9  ;;  %v951_v10 = vsel %vm4515_vm3, %v912_v13, %v913_v2  ;;  %v2891_v13 = vld [vmem:[%s4389_s3 + $0xb0] sm:$0xff]  ;;  %v2880_v2 = vld [vmem:[%s4389_s3 + $0x58] sm:$0xff]  ;;  %vm4518_vm8 = vmmov %vm4515_vm3 }
  0xf6   : > { %v3577_v62 = vpop.f32.mrf.mxu2  ;;  %vm3588_vm11 = vmpackc.low %vm2915_vm7, %vm4415_vm2  ;;  %vm2901_vm7 = vcmp.ne.s32.totalorder %v361_v28, 0  ;;  %1437 = vmatmul.bf16.gmra.mxu1 %v1083_v26  ;;  %v354_v28 = vand.u32 15, %v240_v45  ;;  %v2578_v45 = vpack.c.bf16 %v950_v0, %v951_v10  ;;  %v2890_v0 = vld [vmem:[%s4389_s3 + $0xa8] sm:$0xff] }
  0xf7   : > { %vm3604_vm15 = vmpackc.low %vm4415_vm2, %vm2901_vm7 }
  0xf8   : > { %v4512_v42 = vsel %vm3604_vm15, 4294967295, %v4511_v42  ;;  %vm2916_vm7 = vcmp.ne.s32.totalorder %v354_v28, 15  ;;  %v1403_v28 = vpop.f32.mrf.mxu1 }
  0xf9   : > { %4513 = vst [vmem:[#allocation20_spill] sm:$0xff] %v4512_v42  ;;  %2519 = vmatmul.msk.bf16.gmra.mxu0 %vm3604_vm15, %v2518_v30  ;;  %v2892_v30 = vld [vmem:[%s4389_s3 + $0xb8] sm:$0xff]  ;;  %vm3633_vm15 = vmpackc.low %vm2916_vm7, %vm4415_vm2 }
  0xfa   : > { %2186 = vmatpush.bf16.msrb.mxu1 %v2892_v30  ;;  %v2879_v30 = vld [vmem:[%s4389_s3 + $0x50] sm:$0xff] }
  0xfe   : > { %v3583_v46 = vpop.f32.mrf.mxu2  ;;  %2187 = vmatpush.bf16.msrb.mxu1 %v2891_v13 }
 0x102   : > { %2188 = vmatpush.bf16.msrb.mxu1 %v2890_v0  ;;  %v1405_v0 = vpop.f32.mrf.mxu1 }
 0x103   : > { %2575 = vmatmul.msk.bf16.gmra.mxu2 %vm3588_vm11, %v2574_v41  ;;  %v2883_v41 = vld [vmem:[%s4389_s3 + $0x70] sm:$0xff] }
 0x104   : > { %2098 = vmatpush.bf16.msrb.mxu0 %v2883_v41  ;;  %v1314_v41 = vpop.f32.mrf.mxu0 }
 0x106   : > { %v3612_v51 = vpop.f32.mrf.mxu2 }
 0x108   : > { %2099 = vmatpush.bf16.msrb.mxu0 %v2882_v61  ;;  %v242_v61 = vadd.s32 120, %v3162_v11 }
 0x10a   : > { %v368_v13 = vand.u32 15, %v242_v61 }
 0x10c   : > { %2100 = vmatpush.bf16.msrb.mxu0 %v2881_v20  ;;  %v915_v20 = vrot.slane %v3177_v15, 1  ;;  %v1316_v36 = vpop.f32.mrf.mxu0  ;;  %vm2917_vm7 = vcmp.ne.s32.totalorder %v368_v13, 15 }
 0x10e   : > { %v3627_v29 = vpop.f32.mrf.mxu2  ;;  %v949_v15 = vsel %vm4515_vm3, %v914_v9, %v915_v20 }
 0x110   : > { %2101 = vmatpush.bf16.msrb.mxu0 %v2880_v2  ;;  %v2889_v2 = vld [vmem:[%s4389_s3 + $0xa0] sm:$0xff] }
 0x111   : > { %2189 = vmatpush.bf16.msrb.mxu1 %v2889_v2 }
 0x113   : > { %2579 = vmatmul.msk.bf16.gmra.mxu2 %vm3633_vm15, %v2578_v45  ;;  %v916_v45 = vrot.slane %v3180_v16, 1  ;;  %v2888_v16 = vld [vmem:[%s4389_s3 + $0x98] sm:$0xff] }
 0x114   : > { %2102 = vmatpush.bf16.msrb.mxu0 %v2879_v30  ;;  %v2877_v30 = vld [vmem:[%s4389_s3 + $0x40] sm:$0xff]  ;;  %v1319_v9 = vpop.f32.mrf.mxu0 }
 0x115   : > { %v948_v21 = vsel %vm4518_vm8, %v915_v20, %v916_v45  ;;  %2190 = vmatpush.bf16.msrb.mxu1 %v2888_v16  ;;  %vm3675_vm8 = vmpackc.low %vm2917_vm7, %vm4415_vm2  ;;  %v244_v20 = vadd.s32 136, %v3162_v11  ;;  %v917_v16 = vrot.slane %v3183_v17, 1 }
 0x116   : > { %v3649_v10 = vpop.f32.mrf.mxu2  ;;  %v2582_v2 = vpack.c.bf16 %v948_v21, %v949_v15  ;;  %v2886_v21 = vld [vmem:[%s4389_s3 + $0x88] sm:$0xff]  ;;  %v1408_v15 = vpop.f32.mrf.mxu1  ;;  %vm4521_vm7 = vmmov %vm4515_vm3 }
 0x117   : > { %v382_v56 = vand.u32 15, %v244_v20  ;;  %v947_v44 = vsel %vm4521_vm7, %v916_v45, %v917_v16  ;;  %v3709_v20 = vld [vmem:[%s4388_s2] ss:$0 sm:$0xff] }
 0x118   : > { %2103 = vmatpush.bf16.msrb.mxu0 %v2878_v54  ;;  %v2887_v54 = vld [vmem:[%s4389_s3 + $0x90] sm:$0xff]  ;;  %v1315_v45 = vadd.f32 %v3709_v20, %v1314_v41 }
 0x119   : > { %2191 = vmatpush.bf16.msrb.mxu1 %v2887_v54  ;;  %vm2918_vm2 = vcmp.ne.s32.totalorder %v382_v56, 15  ;;  %v246_v56 = vadd.s32 152, %v3162_v11 }
 0x11a   : > { %vm3702_vm10 = vmpackc.low %vm2918_vm2, %vm4523_vm14  ;;  %v1404_v32 = vadd.f32 %v1403_v28, %v1315_v45 }
 0x11b   : > { %v396_v19 = vand.u32 15, %v246_v56  ;;  %vm4526_vm2 = vmmov %vm4515_vm3 }
 0x11c   : > { %2104 = vmatpush.bf16.msrb.mxu0 %v2877_v30  ;;  %v918_v30 = vrot.slane %v3224_v34, 1  ;;  %v1321_v31 = vpop.f32.mrf.mxu0 }
 0x11d   : > { %2192 = vmatpush.bf16.msrb.mxu1 %v2886_v21  ;;  %vm2919_vm7 = vcmp.ne.s32.totalorder %v396_v19, 15 }
 0x11e   : > { %v3669_v61 = vpop.f32.mrf.mxu2  ;;  %v946_v54 = vsel %vm4515_vm3, %v917_v16, %v918_v30  ;;  %v1410_v34 = vpop.f32.mrf.mxu1  ;;  %vm4527_vm3 = vmmov %vm4526_vm2 }
 0x11f   : > { %v2586_v21 = vpack.c.bf16 %v946_v54, %v947_v44  ;;  %v919_v54 = vrot.slane %v3227_v35, 1  ;;  %vm3726_vm1 = vmpackc.low %vm2919_vm7, %vm4523_vm14 }
 0x120   : > { %v4529_v47 = vsel %vm3726_vm1, 4294967295, %v4528_v47  ;;  %vm4532_vm7 = vmmov %vm4527_vm3 }
 0x121   : > { %v944_v33 = vsel %vm4526_vm2, %v919_v54, %v920_v55  ;;  %v945_v41 = vsel %vm4527_vm3, %v918_v30, %v919_v54  ;;  %vm4530_vm2 = vcmp.lt.s32.totalorder %v3162_v11, 1  ;;  %v922_v54 = vrot.slane %v3277_v59, 1  ;;  %vm4533_vm12 = vmmov %vm4527_vm3 }
 0x122   : > { %v2590_v35 = vpack.c.bf16 %v944_v33, %v945_v41  ;;  %vm4534_vm4 = vmmov %vm4527_vm3 }
 0x123   : > { %2583 = vmatmul.msk.bf16.gmra.mxu2 %vm3675_vm8, %v2582_v2  ;;  %v2885_v2 = vld [vmem:[%s4389_s3 + $0x80] sm:$0xff] }
 0x124   : > { %2193 = vmatpush.bf16.msrb.mxu1 %v2885_v2  ;;  %v1324_v44 = vpop.f32.mrf.mxu0  ;;  %v1317_v2 = vadd.f32 %v3709_v20, %v1316_v36  ;;  %v1320_v36 = vadd.f32 %v3709_v20, %v1319_v9 }
 0x126   : > { %v3688_v13 = vpop.f32.mrf.mxu2  ;;  %v1413_v50 = vpop.f32.mrf.mxu1  ;;  %v1406_v6 = vadd.f32 %v1405_v0, %v1317_v2  ;;  %v1409_v19 = vadd.f32 %v1408_v15, %v1320_v36  ;;  %v921_v2 = vrot.slane %v3255_v48, 1 }
 0x128   : > { %v942_v59 = vsel %vm4533_vm12, %v921_v2, %v922_v54  ;;  %vm4538_vm12 = vmmov %vm4532_vm7 }
 0x12c   : > { %v1326_v28 = vpop.f32.mrf.mxu0 }
 0x12e   : > { %v3699_v42 = vpop.f32.mrf.mxu2  ;;  %v1415_v33 = vpop.f32.mrf.mxu1 }
 0x12f   : > { %4522 = vst [vmem:[#allocation21_spill] sm:$0xff] %v3699_v42 }
 0x133   : > { %2587 = vmatmul.msk.bf16.gmra.mxu2 %vm3702_vm10, %v2586_v21 }
 0x136   : > { %v1492_v16 = vpop.f32.mrf.mxu2 }
 0x137   : > { %v3722_v21 = vadd.f32 %v1492_v16, %v1404_v32  ;;  %v1322_v16 = vadd.f32 %v3709_v20, %v1321_v31 }
 0x139   : > { %v4428_v0 = vrot.slane %v3722_v21, 7  ;;  %v4432_v15 = vrot.slane %v3722_v21, 1 }
 0x13e   : > { %v1494_v1 = vpop.f32.mrf.mxu2 }
 0x13f   : > { %v1495_v42 = vadd.f32 %v1494_v1, %v1406_v6  ;;  %v248_v6 = vadd.s32 168, %v3162_v11 }
 0x141   : > { %v1573_v45 = vrot.slane %v1495_v42, 7  ;;  %v1765_v56 = vpack.c.bf16 %v1495_v42, %v3722_v21  ;;  %v1669_v9 = vrot.slane %v1495_v42, 1 }
 0x143   : > { %2591 = vmatmul.msk.bf16.gmra.mxu2 %vm3726_vm1, %v2590_v35  ;;  %2105 = vmatmul.bf16.vlgmr.msrb.gmra.mxu0 %v1765_v56  ;;  %v3738_v1 = vsel %vm4530_vm2, %v4428_v0, %v1573_v45  ;;  %v410_v35 = vand.u32 15, %v248_v6  ;;  %v1329_v56 = vpop.f32.mrf.mxu0  ;;  %v1411_v0 = vadd.f32 %v1410_v34, %v1322_v16  ;;  %v1730_v42 = vsel %vm4532_vm7, %v4432_v15, %v1669_v9  ;;  %v1418_v6 = vpop.f32.mrf.mxu1 }
 0x144   : > { %4531 = vst [vmem:[#allocation22_spill] sm:$0xff] %v3738_v1 }
 0x145   : > { %vm2920_vm1 = vcmp.ne.s32.totalorder %v410_v35, 15 }
 0x146   : > { %v1497_v32 = vpop.f32.mrf.mxu2 }
 0x147   : > { %v1498_v30 = vadd.f32 %v1497_v32, %v1409_v19  ;;  %v943_v19 = vsel %vm4534_vm4, %v920_v55, %v921_v2  ;;  %vm4537_vm4 = vmmov %vm4530_vm2  ;;  %v250_v2 = vadd.s32 184, %v3162_v11 }
 0x148   : > { %v2594_v16 = vpack.c.bf16 %v942_v59, %v943_v19  ;;  %v923_v19 = vrot.slane %v3280_v60, 1 }
 0x149   : > { %v1574_v41 = vrot.slane %v1498_v30, 7  ;;  %v1670_v36 = vrot.slane %v1498_v30, 1 }
 0x14b   : > { %v1729_v1 = vsel %vm4527_vm3, %v1669_v9, %v1670_v36  ;;  %v3753_v31 = vsel %vm4530_vm2, %v1573_v45, %v1574_v41  ;;  %v1325_v9 = vadd.f32 %v3709_v20, %v1324_v44  ;;  %vm3763_vm3 = vmpackc.low %vm2920_vm1, %vm4523_vm14 }
 0x14c   : > { %v2778_v48 = vpack.c.bf16 %v1729_v1, %v1730_v42  ;;  %vm4540_vm1 = vmmov %vm4530_vm2 }
 0x14d   : > { %v1414_v55 = vadd.f32 %v1413_v50, %v1325_v9  ;;  %v1420_v50 = vpop.f32.mrf.mxu1 }
 0x14e   : > { %v1499_v34 = vpop.f32.mrf.mxu2  ;;  %2779 = vmatmul.msk.bf16.vlgmr.msrb.gmra.mxu1 %vm3439_vm6, %v2778_v48  ;;  %vm4539_vm6 = vmmov %vm4532_vm7 }
 0x14f   : > { %v1500_v32 = vadd.f32 %v1499_v34, %v1411_v0  ;;  %v1331_v0 = vpop.f32.mrf.mxu0  ;;  %v924_v34 = vrot.slane %v3302_v7, 1  ;;  %vm4541_vm7 = vmmov %vm4539_vm6 }
 0x150   : > { %vm4542_vm2 = vmmov %vm4539_vm6 }
 0x151   : > { %v1575_v1 = vrot.slane %v1500_v32, 7  ;;  %v1768_v42 = vpack.c.bf16 %v1500_v32, %v1498_v30  ;;  %v1671_v48 = vrot.slane %v1500_v32, 1  ;;  %v1327_v30 = vadd.f32 %v3709_v20, %v1326_v28 }
 0x152   : > { %v940_v60 = vsel %vm4541_vm7, %v923_v19, %v924_v34  ;;  %v941_v7 = vsel %vm4542_vm2, %v922_v54, %v923_v19 }
 0x153   : > { %2595 = vmatmul.msk.bf16.gmra.mxu2 %vm3763_vm3, %v2594_v16  ;;  %2110 = vmatmul.bf16.gmra.mxu0 %v1768_v42  ;;  %v3771_v53 = vsel %vm4537_vm4, %v1574_v41, %v1575_v1  ;;  %v424_v41 = vand.u32 15, %v250_v2  ;;  %v1416_v42 = vadd.f32 %v1415_v33, %v1327_v30  ;;  %v1728_v44 = vsel %vm4539_vm6, %v1670_v36, %v1671_v48  ;;  %vm4546_vm6 = vmmov %vm4542_vm2 }
 0x154   : > { %v1330_v36 = vadd.f32 %v3709_v20, %v1329_v56  ;;  %v252_v30 = vadd.s32 200, %v3162_v11  ;;  %v4609_v56 = vrot.slane %v3722_v21, 7 }
 0x155   : > { %vm2921_vm4 = vcmp.ne.s32.totalorder %v424_v41, 15 }
 0x156   : > { %v1502_v35 = vpop.f32.mrf.mxu2  ;;  %v1419_v54 = vadd.f32 %v1418_v6, %v1330_v36  ;;  %v438_v36 = vand.u32 15, %v252_v30 }
 0x157   : > { %v1503_v59 = vadd.f32 %v1502_v35, %v1414_v55  ;;  %v1334_v33 = vpop.f32.mrf.mxu0  ;;  %v2598_v35 = vpack.c.bf16 %v940_v60, %v941_v7  ;;  %v926_v60 = vrot.slane %v3327_v24, 1 }
 0x159   : > { %v1576_v9 = vrot.slane %v1503_v59, 7  ;;  %v1672_v16 = vrot.slane %v1503_v59, 1 }
 0x15b   : > { %v1727_v15 = vsel %vm4538_vm12, %v1671_v48, %v1672_v16  ;;  %v3785_v32 = vsel %vm4540_vm1, %v1575_v1, %v1576_v9  ;;  %vm3795_vm12 = vmpackc.low %vm2921_vm4, %vm4523_vm14  ;;  %v1423_v48 = vpop.f32.mrf.mxu1 }
 0x15c   : > { %v2782_v28 = vpack.c.bf16 %v1727_v15, %v1728_v44 }
 0x15e   : > { %v1504_v55 = vpop.f32.mrf.mxu2  ;;  %2783 = vmatmul.msk.bf16.gmra.mxu1 %vm3469_vm0, %v2782_v28  ;;  %vm4545_vm0 = vmmov %vm4540_vm1  ;;  %v925_v28 = vrot.slane %v3305_v8, 1 }
 0x15f   : > { %v1505_v2 = vadd.f32 %v1504_v55, %v1416_v42  ;;  %v1336_v7 = vpop.f32.mrf.mxu0  ;;  %vm4547_vm1 = vmmov %vm4542_vm2 }
 0x160   : > { %vm4548_vm7 = vmmov %vm4545_vm0 }
 0x161   : > { %v1577_v15 = vrot.slane %v1505_v2, 7  ;;  %v1771_v44 = vpack.c.bf16 %v1505_v2, %v1503_v59  ;;  %v1673_v41 = vrot.slane %v1505_v2, 1  ;;  %v1332_v59 = vadd.f32 %v3709_v20, %v1331_v0  ;;  %vm4549_vm2 = vmmov %vm4547_vm1 }
 0x162   : > { %v938_v8 = vsel %vm4549_vm2, %v925_v28, %v926_v60  ;;  %vm4550_vm4 = vmmov %vm4547_vm1 }
 0x163   : > { %2599 = vmatmul.msk.bf16.gmra.mxu2 %vm3795_vm12, %v2598_v35  ;;  %2115 = vmatmul.bf16.gmra.mxu0 %v1771_v44  ;;  %v3803_v37 = vsel %vm4545_vm0, %v1576_v9, %v1577_v15  ;;  %v1421_v9 = vadd.f32 %v1420_v50, %v1332_v59  ;;  %v1726_v44 = vsel %vm4547_vm1, %v1672_v16, %v1673_v41  ;;  %vm2922_vm0 = vcmp.ne.s32.totalorder %v438_v36, 15  ;;  %vm4553_vm1 = vmmov %vm4548_vm7 }
 0x164   : > { %v939_v24 = vsel %vm4550_vm4, %v924_v34, %v925_v28  ;;  %v1335_v16 = vadd.f32 %v3709_v20, %v1334_v33  ;;  %v254_v28 = vadd.s32 216, %v3162_v11 }
 0x166   : > { %v1507_v19 = vpop.f32.mrf.mxu2  ;;  %v1424_v34 = vadd.f32 %v1423_v48, %v1335_v16  ;;  %v452_v16 = vand.u32 15, %v254_v28 }
 0x167   : > { %v1508_v42 = vadd.f32 %v1507_v19, %v1419_v54  ;;  %v1425_v54 = vpop.f32.mrf.mxu1  ;;  %v2602_v19 = vpack.c.bf16 %v938_v8, %v939_v24  ;;  %v927_v8 = vrot.slane %v3330_v25, 1  ;;  %v928_v24 = vrot.slane %v3352_v39, 1 }
 0x169   : > { %v1578_v6 = vrot.slane %v1508_v42, 7  ;;  %v1674_v55 = vrot.slane %v1508_v42, 1  ;;  %v936_v25 = vsel %vm4550_vm4, %v927_v8, %v928_v24 }
 0x16b   : > { %v1725_v35 = vsel %vm4546_vm6, %v1673_v41, %v1674_v55  ;;  %v3817_v2 = vsel %vm4548_vm7, %v1577_v15, %v1578_v6  ;;  %vm3827_vm6 = vmpackc.low %vm2922_vm0, %vm4523_vm14 }
 0x16c   : > { %v2786_v0 = vpack.c.bf16 %v1725_v35, %v1726_v44  ;;  %v1339_v35 = vpop.f32.mrf.mxu0  ;;  %vm4555_vm7 = vmmov %vm4549_vm2 }
 0x16d   : > { %vm4557_vm0 = vmmov %vm4550_vm4 }
 0x16e   : > { %v1509_v50 = vpop.f32.mrf.mxu2  ;;  %2787 = vmatmul.msk.bf16.gmra.mxu1 %vm3499_vm13, %v2786_v0  ;;  %vm4554_vm13 = vmmov %vm4549_vm2  ;;  %v937_v39 = vsel %vm4557_vm0, %v926_v60, %v927_v8  ;;  %v256_v8 = vadd.s32 232, %v3162_v11 }
 0x16f   : > { %v1510_v30 = vadd.f32 %v1509_v50, %v1421_v9  ;;  %v1428_v9 = vpop.f32.mrf.mxu1  ;;  %vm4556_vm2 = vmmov %vm4553_vm1 }
 0x171   : > { %v1579_v41 = vrot.slane %v1510_v30, 7  ;;  %v1774_v59 = vpack.c.bf16 %v1510_v30, %v1508_v42  ;;  %v1675_v44 = vrot.slane %v1510_v30, 1  ;;  %v1337_v42 = vadd.f32 %v3709_v20, %v1336_v7 }
 0x173   : > { %2603 = vmatmul.msk.bf16.gmra.mxu2 %vm3827_vm6, %v2602_v19  ;;  %2120 = vmatmul.bf16.gmra.mxu0 %v1774_v59  ;;  %v3835_v22 = vsel %vm4553_vm1, %v1578_v6, %v1579_v41  ;;  %v1426_v6 = vadd.f32 %v1425_v54, %v1337_v42  ;;  %v1724_v59 = vsel %vm4555_vm7, %v1674_v55, %v1675_v44  ;;  %vm2923_vm1 = vcmp.ne.s32.totalorder %v452_v16, 15  ;;  %vm4560_vm7 = vmmov %vm4556_vm2 }
 0x174   : > { %v1341_v7 = vpop.f32.mrf.mxu0  ;;  %v1340_v55 = vadd.f32 %v3709_v20, %v1339_v35  ;;  %vm4563_vm4 = vmmov %vm4560_vm7 }
 0x176   : > { %v1512_v36 = vpop.f32.mrf.mxu2  ;;  %v1429_v60 = vadd.f32 %v1428_v9, %v1340_v55  ;;  %v466_v55 = vand.u32 15, %v256_v8 }
 0x177   : > { %v1513_v0 = vadd.f32 %v1512_v36, %v1424_v34  ;;  %v2606_v36 = vpack.c.bf16 %v936_v25, %v937_v39  ;;  %v929_v25 = vrot.slane %v3355_v40, 1  ;;  %v930_v39 = vrot.slane %v3393_v3, 1 }
 0x179   : > { %v1580_v48 = vrot.slane %v1513_v0, 7  ;;  %v1676_v50 = vrot.slane %v1513_v0, 1  ;;  %v934_v40 = vsel %vm4557_vm0, %v929_v25, %v930_v39 }
 0x17b   : > { %v1723_v19 = vsel %vm4554_vm13, %v1675_v44, %v1676_v50  ;;  %v3849_v30 = vsel %vm4556_vm2, %v1579_v41, %v1580_v48  ;;  %vm3859_vm13 = vmpackc.low %vm2923_vm1, %vm4523_vm14  ;;  %v1430_v44 = vpop.f32.mrf.mxu1 }
 0x17c   : > { %v2790_v34 = vpack.c.bf16 %v1723_v19, %v1724_v59  ;;  %vm4562_vm2 = vmmov %vm4557_vm0 }
 0x17d   : > { %vm4564_vm1 = vmmov %vm4557_vm0 }
 0x17e   : > { %v1514_v54 = vpop.f32.mrf.mxu2  ;;  %2791 = vmatmul.msk.bf16.gmra.mxu1 %vm3529_vm9, %v2790_v34  ;;  %vm4561_vm9 = vmmov %vm4557_vm0  ;;  %v935_v3 = vsel %vm4564_vm1, %v928_v24, %v929_v25 }
 0x17f   : > { %v1515_v28 = vadd.f32 %v1514_v54, %v1426_v6  ;;  %v1344_v6 = vpop.f32.mrf.mxu0 }
 0x180   : > { %v1345_v8 = vadd.f32 %v3709_v20, %v1344_v6 }
 0x181   : > { %v1581_v42 = vrot.slane %v1515_v28, 7  ;;  %v1777_v19 = vpack.c.bf16 %v1515_v28, %v1513_v0  ;;  %v1677_v59 = vrot.slane %v1515_v28, 1  ;;  %v1342_v0 = vadd.f32 %v3709_v20, %v1341_v7 }
 0x183   : > { %2607 = vmatmul.msk.bf16.gmra.mxu2 %vm3859_vm13, %v2606_v36  ;;  %2125 = vmatmul.bf16.gmra.mxu0 %v1777_v19  ;;  %v3867_v57 = vsel %vm4560_vm7, %v1580_v48, %v1581_v42  ;;  %v1433_v48 = vpop.f32.mrf.mxu1  ;;  %v1431_v36 = vadd.f32 %v1430_v44, %v1342_v0  ;;  %v1722_v35 = vsel %vm4562_vm2, %v1676_v50, %v1677_v59  ;;  %vm2924_vm7 = vcmp.ne.s32.totalorder %v466_v55, 15  ;;  %v3895_v0 = vpop.f32.mrf.mxu3  ;;  %vm4568_vm2 = vmmov %vm4557_vm0 }
 0x184   : > { %v2610_v50 = vpack.c.bf16 %v934_v40, %v935_v3  ;;  %v1434_v14 = vadd.f32 %v1433_v48, %v1345_v8  ;;  %v258_v55 = vadd.s32 248, %v3162_v11  ;;  %v931_v40 = vrot.slane %v3364_v49, 1 }
 0x185   : > { %v4618_v11 = vpack.c.bf16 %v3771_v53, %v3753_v31  ;;  %v4631_v53 = vld [vmem:[#allocation18_spill] sm:$0xff] }
 0x186   : > { %v1517_v16 = vpop.f32.mrf.mxu2  ;;  %v480_v48 = vand.u32 15, %v258_v55  ;;  %v4571_v55 = vrot.slane %v3369_v52, 1 }
 0x187   : > { %v1518_v34 = vadd.f32 %v1517_v16, %v1429_v60 }
 0x189   : > { %v1582_v9 = vrot.slane %v1518_v34, 7  ;;  %v1678_v54 = vrot.slane %v1518_v34, 1 }
 0x18b   : > { %v1721_v19 = vsel %vm4561_vm9, %v1677_v59, %v1678_v54  ;;  %v3881_v28 = vsel %vm4563_vm4, %v1581_v42, %v1582_v9  ;;  %vm3891_vm9 = vmpackc.low %vm2924_vm7, %vm4523_vm14  ;;  %v1435_v6 = vpop.f32.mrf.mxu1 }
 0x18c   : > { %v2794_v7 = vpack.c.bf16 %v1721_v19, %v1722_v35  ;;  %v1346_v35 = vpop.f32.mrf.mxu0  ;;  %vm4572_vm7 = vmmov %vm4564_vm1 }
 0x18e   : > { %v1519_v60 = vpop.f32.mrf.mxu2  ;;  %2795 = vmatmul.msk.bf16.gmra.mxu1 %vm3559_vm5, %v2794_v7  ;;  %vm4567_vm5 = vmmov %vm4563_vm4  ;;  %v1347_v7 = vadd.f32 %v3709_v20, %v1346_v35 }
 0x18f   : > { %v1520_v44 = vadd.f32 %v1519_v60, %v1431_v36  ;;  %vm4569_vm4 = vmmov %vm4557_vm0 }
 0x190   : > { %vm4570_vm0 = vmmov %vm4567_vm5 }
 0x191   : > { %v1583_v16 = vrot.slane %v1520_v44, 7  ;;  %v1780_v59 = vpack.c.bf16 %v1520_v44, %v1518_v34  ;;  %v1679_v19 = vrot.slane %v1520_v44, 1 }
 0x193   : > { %2611 = vmatmul.msk.bf16.gmra.mxu2 %vm3891_vm9, %v2610_v50  ;;  %2130 = vmatmul.bf16.gmra.mxu0 %v1780_v59  ;;  %v3901_v24 = vsel %vm4567_vm5, %v1582_v9, %v1583_v16  ;;  %v2876_v9 = vld [vmem:[%s4389_s3 + $0x38] sm:$0xff]  ;;  %v1436_v50 = vadd.f32 %v1435_v6, %v1347_v7  ;;  %v1720_v44 = vsel %vm4569_vm4, %v1678_v54, %v1679_v19  ;;  %vm2925_vm5 = vcmp.ne.s32.totalorder %v480_v48, 15  ;;  %v1438_v54 = vpop.f32.mrf.mxu1  ;;  %vm4575_vm4 = vmmov %vm4570_vm0 }
 0x194   : > { %v1349_v8 = vpop.f32.mrf.mxu0  ;;  %2008 = vmatpush.bf16.msrb.mxu3 %v2876_v9  ;;  %v964_v6 = vsel %vm4572_vm7, %v931_v40, %v4571_v55  ;;  %v4630_v31 = vpack.c.bf16 %v3901_v24, %v3881_v28  ;;  %v4230_v28 = vld [vmem:[%s4390_s4] ss:$0 sm:$0xff] }
 0x196   : > { %v1522_v36 = vpop.f32.mrf.mxu2 }
 0x197   : > { %v1523_v34 = vadd.f32 %v1522_v36, %v1434_v14  ;;  %v933_v14 = vsel %vm4564_vm1, %v930_v39, %v931_v40  ;;  %v1445_v36 = vpop.f32.mrf.mxu3 }
 0x198   : > { %v2614_v9 = vpack.c.bf16 %v964_v6, %v933_v14 }
 0x199   : > { %v1584_v3 = vrot.slane %v1523_v34, 7  ;;  %v1680_v60 = vrot.slane %v1523_v34, 1 }
 0x19b   : > { %v1719_v59 = vsel %vm4568_vm2, %v1679_v19, %v1680_v60  ;;  %v3917_v35 = vsel %vm4570_vm0, %v1583_v16, %v1584_v3  ;;  %v1350_v16 = vadd.f32 %v3709_v20, %v1349_v8  ;;  %vm3929_vm2 = vmpackc.low %vm2925_vm5, %vm4523_vm14 }
 0x19c   : > { %v2798_v49 = vpack.c.bf16 %v1719_v59, %v1720_v44  ;;  %v1351_v48 = vpop.f32.mrf.mxu0  ;;  %vm4576_vm14 = vmmov %vm4564_vm1  ;;  %v4627_v59 = vpack.c.bf16 %v3867_v57, %v3849_v30  ;;  %v4640_v57 = vld [vmem:[#allocation5_spill] sm:$0xff] }
 0x19d   : > { %v1439_v40 = vadd.f32 %v1438_v54, %v1350_v16  ;;  %v1352_v55 = vadd.f32 %v3709_v20, %v1351_v48  ;;  %v2875_v54 = vld [vmem:[%s4389_s3 + $0x30] sm:$0xff]  ;;  %vm4580_vm5 = vmmov %vm4570_vm0 }
 0x19e   : > { %v1524_v7 = vpop.f32.mrf.mxu2  ;;  %2799 = vmatmul.msk.bf16.gmra.mxu1 %vm3588_vm11, %v2798_v49  ;;  %vm4577_vm11 = vmmov %vm4564_vm1  ;;  %2009 = vmatpush.bf16.msrb.mxu3 %v2875_v54 }
 0x19f   : > { %v1525_v19 = vadd.f32 %v1524_v7, %v1436_v50  ;;  %v1448_v44 = vpop.f32.mrf.mxu3  ;;  %vm4578_vm1 = vmmov %vm4570_vm0 }
 0x1a1   : > { %v1585_v52 = vrot.slane %v1525_v19, 7  ;;  %v1783_v39 = vpack.c.bf16 %v1525_v19, %v1523_v34  ;;  %v1681_v49 = vrot.slane %v1525_v19, 1  ;;  %v1440_v34 = vpop.f32.mrf.mxu1 }
 0x1a2   : > { %v1441_v16 = vadd.f32 %v1440_v34, %v1352_v55 }
 0x1a3   : > { %2615 = vmatmul.msk.bf16.gmra.mxu2 %vm3929_vm2, %v2614_v9  ;;  %2135 = vmatmul.bf16.gmra.mxu0 %v1783_v39  ;;  %v3937_v23 = vsel %vm4575_vm4, %v1584_v3, %v1585_v52  ;;  %v1718_v9 = vsel %vm4577_vm11, %v1680_v60, %v1681_v49  ;;  %vm4581_vm4 = vmmov %vm4572_vm7 }
 0x1a4   : > { %vm4584_vm11 = vmmov %vm4570_vm0 }
 0x1a6   : > { %v1527_v50 = vpop.f32.mrf.mxu2 }
 0x1a7   : > { %v1528_v14 = vadd.f32 %v1527_v50, %v1439_v40  ;;  %v1355_v50 = vadd.f32 %v3709_v20, %v3457_v12  ;;  %v1450_v55 = vpop.f32.mrf.mxu3 }
 0x1a9   : > { %v1586_v6 = vrot.slane %v1528_v14, 7  ;;  %v1682_v7 = vrot.slane %v1528_v14, 1 }
 0x1ab   : > { %v1717_v3 = vsel %vm4576_vm14, %v1681_v49, %v1682_v7  ;;  %v3951_v19 = vsel %vm4570_vm0, %v1585_v52, %v1586_v6  ;;  %v1444_v49 = vadd.f32 %v3895_v0, %v1355_v50  ;;  %vm4582_vm14 = vmmov %vm4570_vm0 }
 0x1ac   : > { %v2802_v39 = vpack.c.bf16 %v1717_v3, %v1718_v9  ;;  %vm4585_vm0 = vmmov %vm4581_vm4 }
 0x1ae   : > { %v1529_v40 = vpop.f32.mrf.mxu2  ;;  %2803 = vmatmul.msk.bf16.gmra.mxu1 %vm3633_vm15, %v2802_v39  ;;  %vm4579_vm15 = vmmov %vm4572_vm7 }
 0x1af   : > { %v1530_v48 = vadd.f32 %v1529_v40, %v1441_v16  ;;  %v1357_v16 = vadd.f32 %v3709_v20, %v3463_v27 }
 0x1b1   : > { %v1587_v34 = vrot.slane %v1530_v48, 7  ;;  %v1786_v8 = vpack.c.bf16 %v1530_v48, %v1528_v14  ;;  %v1683_v26 = vrot.slane %v1530_v48, 1  ;;  %v1453_v14 = vpop.f32.mrf.mxu3  ;;  %v1446_v27 = vadd.f32 %v1445_v36, %v1357_v16 }
 0x1b3   : > { %2140 = vmatmul.bf16.gmra.mxu0 %v1786_v8  ;;  %v3959_v60 = vsel %vm4578_vm1, %v1586_v6, %v1587_v34  ;;  %v2874_v8 = vld [vmem:[%s4389_s3 + $0x28] sm:$0xff]  ;;  %v1716_v39 = vsel %vm4572_vm7, %v1682_v7, %v1683_v26  ;;  %vm4588_vm7 = vnez %v4529_v47 }
 0x1b4   : > { %2010 = vmatpush.bf16.msrb.mxu3 %v2874_v8 }
 0x1b6   : > { %v1532_v54 = vpop.f32.mrf.mxu2 }
 0x1b7   : > { %v1533_v3 = vadd.f32 %v1532_v54, %v1444_v49  ;;  %v1360_v49 = vadd.f32 %v3709_v20, %v3487_v58  ;;  %v1362_v58 = vadd.f32 %v3709_v20, %v3493_v5 }
 0x1b9   : > { %v1588_v12 = vrot.slane %v1533_v3, 7  ;;  %v1684_v9 = vrot.slane %v1533_v3, 1  ;;  %v1449_v4 = vadd.f32 %v1448_v44, %v1360_v49 }
 0x1bb   : > { %v1715_v6 = vsel %vm4579_vm15, %v1683_v26, %v1684_v9  ;;  %v3975_v0 = vsel %vm4580_vm5, %v1587_v34, %v1588_v12  ;;  %v1455_v26 = vpop.f32.mrf.mxu3  ;;  %vm4587_vm15 = vmmov %vm4578_vm1 }
 0x1bc   : > { %v2806_v40 = vpack.c.bf16 %v1715_v6, %v1716_v39  ;;  %v1451_v39 = vadd.f32 %v1450_v55, %v1362_v58  ;;  %vm4589_vm5 = vmmov %vm4585_vm0 }
 0x1be   : > { %v1534_v48 = vpop.f32.mrf.mxu2  ;;  %2807 = vmatmul.msk.bf16.gmra.mxu1 %vm3675_vm8, %v2806_v40  ;;  %vm4583_vm8 = vmmov %vm4581_vm4 }
 0x1bf   : > { %v1535_v50 = vadd.f32 %v1534_v48, %v1446_v27  ;;  %v1365_v48 = vadd.f32 %v3709_v20, %v3517_v43  ;;  %v1367_v43 = vadd.f32 %v3709_v20, %v3523_v63 }
 0x1c1   : > { %v1589_v54 = vrot.slane %v1535_v50, 7  ;;  %v1685_v52 = vrot.slane %v1535_v50, 1  ;;  %v1789_v25 = vpack.c.bf16 %v1535_v50, %v1533_v3  ;;  %v1454_v55 = vadd.f32 %v1453_v14, %v1365_v48 }
 0x1c3   : > { %2145 = vmatmul.bf16.gmra.mxu0 %v1789_v25  ;;  %v1714_v7 = vsel %vm4581_vm4, %v1684_v9, %v1685_v52  ;;  %v3985_v34 = vsel %vm4582_vm14, %v1588_v12, %v1589_v54  ;;  %v2873_v25 = vld [vmem:[%s4389_s3 + $0x20] sm:$0xff]  ;;  %v1458_v5 = vpop.f32.mrf.mxu3  ;;  %vm4590_vm4 = vmmov %vm4578_vm1 }
 0x1c4   : > { %2011 = vmatpush.bf16.msrb.mxu3 %v2873_v25  ;;  %vm4591_vm14 = vmmov %vm4585_vm0  ;;  %v4639_v30 = vpack.c.bf16 %v3985_v34, %v3975_v0 }
 0x1c6   : > { %v1537_v16 = vpop.f32.mrf.mxu2 }
 0x1c7   : > { %v1538_v8 = vadd.f32 %v1537_v16, %v1449_v4 }
 0x1c9   : > { %v1590_v6 = vrot.slane %v1538_v8, 7  ;;  %v1686_v3 = vrot.slane %v1538_v8, 1 }
 0x1cb   : > { %v1713_v12 = vsel %vm4583_vm8, %v1685_v52, %v1686_v3  ;;  %v3998_v9 = vsel %vm4584_vm11, %v1589_v54, %v1590_v6  ;;  %v1460_v58 = vpop.f32.mrf.mxu3  ;;  %vm4592_vm8 = vmmov %vm4578_vm1 }
 0x1cc   : > { %v2810_v44 = vpack.c.bf16 %v1713_v12, %v1714_v7  ;;  %vm4593_vm11 = vmmov %vm4585_vm0 }
 0x1ce   : > { %v1539_v40 = vpop.f32.mrf.mxu2  ;;  %2811 = vmatmul.msk.bf16.gmra.mxu1 %vm3702_vm10, %v2810_v44  ;;  %vm4586_vm10 = vmmov %vm4585_vm0  ;;  %v1456_v44 = vadd.f32 %v1455_v26, %v1367_v43 }
 0x1cf   : > { %v1540_v27 = vadd.f32 %v1539_v40, %v1451_v39  ;;  %v1370_v40 = vadd.f32 %v3709_v20, %v3547_v38  ;;  %v1372_v38 = vadd.f32 %v3709_v20, %v3553_v18 }
 0x1d1   : > { %v1591_v50 = vrot.slane %v1540_v27, 7  ;;  %v1687_v49 = vrot.slane %v1540_v27, 1  ;;  %v1792_v4 = vpack.c.bf16 %v1540_v27, %v1538_v8  ;;  %v1459_v26 = vadd.f32 %v1458_v5, %v1370_v40 }
 0x1d3   : > { %2150 = vmatmul.bf16.gmra.mxu0 %v1792_v4  ;;  %v1712_v52 = vsel %vm4585_vm0, %v1686_v3, %v1687_v49  ;;  %v4008_v54 = vsel %vm4578_vm1, %v1590_v6, %v1591_v50  ;;  %v2872_v3 = vld [vmem:[%s4389_s3 + $0x18] sm:$0xff]  ;;  %vm4594_vm0 = vmmov %vm4578_vm1 }
 0x1d4   : > { %2012 = vmatpush.bf16.msrb.mxu3 %v2872_v3  ;;  %v2871_v3 = vld [vmem:[%s4389_s3 + $0x10] sm:$0xff]  ;;  %vm4596_vm1 = vmmov %vm4594_vm0 }
 0x1d6   : > { %v1542_v7 = vpop.f32.mrf.mxu2 }
 0x1d7   : > { %v1543_v16 = vadd.f32 %v1542_v7, %v1454_v55  ;;  %v1463_v55 = vpop.f32.mrf.mxu3 }
 0x1d8   : > { %2013 = vmatpush.bf16.msrb.mxu3 %v2871_v3  ;;  %v4062_v3 = vpop.f32.mrf.mxu1 }
 0x1d9   : > { %v1592_v25 = vrot.slane %v1543_v16, 7  ;;  %v1688_v8 = vrot.slane %v1543_v16, 1 }
 0x1db   : > { %v1711_v6 = vsel %vm4586_vm10, %v1687_v49, %v1688_v8  ;;  %v4021_v12 = vsel %vm4587_vm15, %v1591_v50, %v1592_v25  ;;  %vm4598_vm15 = vmmov %vm4594_vm0 }
 0x1dc   : > { %v2814_v14 = vpack.c.bf16 %v1711_v6, %v1712_v52  ;;  %v1461_v6 = vadd.f32 %v1460_v58, %v1372_v38 }
 0x1de   : > { %v1544_v39 = vpop.f32.mrf.mxu2  ;;  %2815 = vmatmul.msk.bf16.gmra.mxu1 %vm4588_vm7, %v2814_v14  ;;  %vm4600_vm7 = vmmov %vm4594_vm0 }
 0x1df   : > { %v1545_v63 = vadd.f32 %v1544_v39, %v1456_v44  ;;  %v1465_v14 = vpop.f32.mrf.mxu3  ;;  %v4046_v44 = vpop.f32.mrf.mxu0 }
 0x1e1   : > { %v1593_v27 = vrot.slane %v1545_v63, 7  ;;  %v1689_v48 = vrot.slane %v1545_v63, 1  ;;  %v1795_v4 = vpack.c.bf16 %v1545_v63, %v1543_v16  ;;  %v1375_v63 = vadd.f32 %v3709_v20, %v3577_v62 }
 0x1e3   : > { %2155 = vmatmul.bf16.gmra.mxu0 %v1795_v4  ;;  %v1710_v49 = vsel %vm4589_vm5, %v1688_v8, %v1689_v48  ;;  %v4031_v50 = vsel %vm4590_vm4, %v1592_v25, %v1593_v27  ;;  %v1464_v45 = vadd.f32 %v1463_v55, %v1375_v63  ;;  %v1380_v63 = vadd.f32 %v3709_v20, %v3612_v51  ;;  %vm4602_vm4 = vmmov %vm4594_vm0 }
 0x1e6   : > { %v1547_v52 = vpop.f32.mrf.mxu2 }
 0x1e7   : > { %v1548_v7 = vadd.f32 %v1547_v52, %v1459_v26  ;;  %v1468_v52 = vpop.f32.mrf.mxu3  ;;  %v4060_v38 = vpop.f32.mrf.mxu0 }
 0x1e8   : > { %v1469_v51 = vadd.f32 %v1468_v52, %v1380_v63 }
 0x1e9   : > { %v1594_v43 = vrot.slane %v1548_v7, 7  ;;  %v1690_v16 = vrot.slane %v1548_v7, 1 }
 0x1eb   : > { %v1709_v8 = vsel %vm4591_vm14, %v1689_v48, %v1690_v16  ;;  %v4044_v25 = vsel %vm4592_vm8, %v1593_v27, %v1594_v43  ;;  %vm4604_vm14 = vmmov %vm4594_vm0 }
 0x1ec   : > { %v2818_v5 = vpack.c.bf16 %v1709_v8, %v1710_v49  ;;  %v4081_v49 = vpop.f32.mrf.mxu1 }
 0x1ee   : > { %v1549_v18 = vpop.f32.mrf.mxu2  ;;  %2819 = vmatmul.msk.bf16.gmra.mxu1 %vm3763_vm3, %v2818_v5  ;;  %vm4595_vm3 = vmmov %vm4589_vm5 }
 0x1ef   : > { %v1550_v39 = vadd.f32 %v1549_v18, %v1461_v6  ;;  %vm4597_vm10 = vmmov %vm4595_vm3 }
 0x1f0   : > { %vm4601_vm5 = vmmov %vm4595_vm3 }
 0x1f1   : > { %v1595_v40 = vrot.slane %v1550_v39, 7  ;;  %v1691_v48 = vrot.slane %v1550_v39, 1  ;;  %v1798_v4 = vpack.c.bf16 %v1550_v39, %v1548_v7  ;;  %v1377_v7 = vadd.f32 %v3709_v20, %v3583_v46  ;;  %vm4605_vm8 = vmmov %vm4595_vm3 }
 0x1f3   : > { %2160 = vmatmul.bf16.gmra.mxu0 %v1798_v4  ;;  %v1708_v27 = vsel %vm4593_vm11, %v1690_v16, %v1691_v48  ;;  %v4056_v58 = vsel %vm4594_vm0, %v1594_v43, %v1595_v40  ;;  %v2870_v43 = vld [vmem:[%s4389_s3 + $0x8] sm:$0xff]  ;;  %v1466_v18 = vadd.f32 %v1465_v14, %v1377_v7  ;;  %v1470_v4 = vpop.f32.mrf.mxu3  ;;  %vm4606_vm11 = vmmov %vm4594_vm0 }
 0x1f4   : > { %2014 = vmatpush.bf16.msrb.mxu3 %v2870_v43 }
 0x1f6   : > { %v1552_v26 = vpop.f32.mrf.mxu2 }
 0x1f7   : > { %v1553_v62 = vadd.f32 %v1552_v26, %v1464_v45  ;;  %v4079_v45 = vpop.f32.mrf.mxu0 }
 0x1f9   : > { %v1596_v8 = vrot.slane %v1553_v62, 7  ;;  %v1692_v16 = vrot.slane %v1553_v62, 1 }
 0x1fb   : > { %v1707_v5 = vsel %vm4595_vm3, %v1691_v48, %v1692_v16  ;;  %v4073_v55 = vsel %vm4596_vm1, %v1595_v40, %v1596_v8  ;;  %vm4611_vm1 = vmmov %vm4601_vm5 }
 0x1fc   : > { %v2822_v6 = vpack.c.bf16 %v1707_v5, %v1708_v27  ;;  %v1382_v5 = vadd.f32 %v3709_v20, %v3627_v29 }
 0x1fe   : > { %v1554_v39 = vpop.f32.mrf.mxu2  ;;  %2823 = vmatmul.msk.bf16.gmra.mxu1 %vm3795_vm12, %v2822_v6  ;;  %vm4599_vm12 = vmmov %vm4595_vm3  ;;  %v1471_v63 = vadd.f32 %v1470_v4, %v1382_v5  ;;  %v1390_v4 = vadd.f32 %v3709_v20, %v3688_v13 }
 0x1ff   : > { %v1555_v46 = vadd.f32 %v1554_v39, %v1466_v18  ;;  %v2869_v18 = vld [vmem:[%s4389_s3] sm:$0xff]  ;;  %v4096_v39 = vpop.f32.mrf.mxu0 }
 0x200   : > { %2015 = vmatpush.bf16.msrb.mxu3 %v2869_v18 }
 0x201   : > { %v1597_v26 = vrot.slane %v1555_v46, 7  ;;  %v1693_v48 = vrot.slane %v1555_v46, 1  ;;  %v1801_v43 = vpack.c.bf16 %v1555_v46, %v1553_v62  ;;  %v4104_v46 = vpop.f32.mrf.mxu1 }
 0x203   : > { %2165 = vmatmul.bf16.gmra.mxu0 %v1801_v43  ;;  %v1706_v14 = vsel %vm4597_vm10, %v1692_v16, %v1693_v48  ;;  %v4087_v1 = vsel %vm4598_vm15, %v1596_v8, %v1597_v26  ;;  %v1473_v16 = vpop.f32.mrf.mxu3  ;;  %vm4613_vm10 = vmmov %vm4611_vm1 }
 0x206   : > { %v1557_v27 = vpop.f32.mrf.mxu2 }
 0x207   : > { %v1558_v7 = vadd.f32 %v1557_v27, %v1469_v51  ;;  %v1385_v27 = vadd.f32 %v3709_v20, %v3649_v10  ;;  %v4118_v5 = vpop.f32.mrf.mxu0 }
 0x209   : > { %v1598_v62 = vrot.slane %v1558_v7, 7  ;;  %v1694_v6 = vrot.slane %v1558_v7, 1  ;;  %v1474_v15 = vadd.f32 %v1473_v16, %v1385_v27 }
 0x20b   : > { %v1705_v8 = vsel %vm4599_vm12, %v1693_v48, %v1694_v6  ;;  %v4102_v52 = vsel %vm4600_vm7, %v1597_v26, %v1598_v62 }
 0x20c   : > { %v2826_v29 = vpack.c.bf16 %v1705_v8, %v1706_v14  ;;  %v1475_v14 = vpop.f32.mrf.mxu3  ;;  %v4120_v8 = vpop.f32.mrf.mxu1 }
 0x20e   : > { %v1559_v43 = vpop.f32.mrf.mxu2  ;;  %2827 = vmatmul.msk.bf16.gmra.mxu1 %vm3827_vm6, %v2826_v29  ;;  %vm4603_vm6 = vmmov %vm4595_vm3 }
 0x20f   : > { %v1560_v51 = vadd.f32 %v1559_v43, %v1471_v63 }
 0x211   : > { %v1599_v40 = vrot.slane %v1560_v51, 7  ;;  %v1695_v47 = vrot.slane %v1560_v51, 1  ;;  %v1804_v48 = vpack.c.bf16 %v1560_v51, %v1558_v7  ;;  %v1387_v7 = vadd.f32 %v3709_v20, %v3669_v61 }
 0x213   : > { %2170 = vmatmul.bf16.gmra.mxu0 %v1804_v48  ;;  %v1704_v26 = vsel %vm4601_vm5, %v1694_v6, %v1695_v47  ;;  %v4114_v18 = vsel %vm4602_vm4, %v1598_v62, %v1599_v40  ;;  %v1476_v51 = vadd.f32 %v1475_v14, %v1387_v7  ;;  %v4132_v48 = vpop.f32.mrf.mxu0  ;;  %vm4632_vm4 = vnez %v4631_v53 }
 0x214   : > { %v4134_v61 = vpop.f32.mrf.mxu1 }
 0x216   : > { %v1562_v10 = vpop.f32.mrf.mxu2 }
 0x217   : > { %v1563_v29 = vadd.f32 %v1562_v10, %v1474_v15  ;;  %v1478_v10 = vpop.f32.mrf.mxu3 }
 0x218   : > { %v1479_v14 = vadd.f32 %v1478_v10, %v1390_v4 }
 0x219   : > { %v1600_v63 = vrot.slane %v1563_v29, 7  ;;  %v1696_v6 = vrot.slane %v1563_v29, 1 }
 0x21b   : > { %v1703_v62 = vsel %vm4603_vm6, %v1695_v47, %v1696_v6  ;;  %v4128_v43 = vsel %vm4604_vm14, %v1599_v40, %v1600_v63 }
 0x21c   : > { %v2830_v16 = vpack.c.bf16 %v1703_v62, %v1704_v26 }
 0x21e   : > { %v1564_v27 = vpop.f32.mrf.mxu2  ;;  %2831 = vmatmul.msk.bf16.gmra.mxu1 %vm3859_vm13, %v2830_v16  ;;  %v4607_v16 = vld [vmem:[#allocation21_spill] sm:$0xff]  ;;  %vm4608_vm13 = vmmov %vm4595_vm3 }
 0x21f   : > { %v1565_v15 = vadd.f32 %v1564_v27, %v1476_v51  ;;  %v1392_v13 = vadd.f32 %v3709_v20, %v4607_v16  ;;  %v4148_v51 = vpop.f32.mrf.mxu0  ;;  %v1480_v27 = vpop.f32.mrf.mxu3  ;;  %vm4610_vm3 = vmmov %vm4594_vm0 }
 0x221   : > { %v1601_v47 = vrot.slane %v1565_v15, 7  ;;  %v1697_v17 = vrot.slane %v1565_v15, 1  ;;  %v1807_v36 = vpack.c.bf16 %v1565_v15, %v1563_v29  ;;  %v4150_v15 = vpop.f32.mrf.mxu1  ;;  %v1481_v10 = vadd.f32 %v1480_v27, %v1392_v13 }
 0x223   : > { %2175 = vmatmul.bf16.gmra.mxu0 %v1807_v36  ;;  %v1702_v40 = vsel %vm4605_vm8, %v1696_v6, %v1697_v17  ;;  %v4142_v41 = vsel %vm4606_vm11, %v1600_v63, %v1601_v47  ;;  %vm4641_vm8 = vnez %v4640_v57 }
 0x226   : > { %v1567_v7 = vpop.f32.mrf.mxu2 }
 0x227   : > { %v1568_v62 = vadd.f32 %v1567_v7, %v1479_v14  ;;  %v4160_v33 = vpop.f32.mrf.mxu0 }
 0x229   : > { %v1602_v29 = vrot.slane %v1568_v62, 7  ;;  %v1698_v36 = vrot.slane %v1568_v62, 1 }
 0x22b   : > { %v1701_v63 = vsel %vm4608_vm13, %v1697_v17, %v1698_v36  ;;  %v4156_v6 = vsel %vm4594_vm0, %v1601_v47, %v1602_v29 }
 0x22c   : > { %v2834_v4 = vpack.c.bf16 %v1701_v63, %v1702_v40  ;;  %v4612_v40 = vrot.slane %v3722_v21, 1 }
 0x22e   : > { %v1569_v14 = vpop.f32.mrf.mxu2  ;;  %2835 = vmatmul.msk.bf16.gmra.mxu1 %vm3891_vm9, %v2834_v4  ;;  %vm4614_vm9 = vmmov %vm4594_vm0  ;;  %v4621_v4 = vpack.c.bf16 %v3803_v37, %v3785_v32  ;;  %v4633_v32 = vpack.c.bf16 %v3937_v23, %v3917_v35  ;;  %v4634_v37 = vld [vmem:[#allocation19_spill] sm:$0xff] }
 0x22f   : > { %v1570_v20 = vadd.f32 %v1569_v14, %v1481_v10  ;;  %v4622_v10 = vld [vmem:[#allocation15_spill] sm:$0xff]  ;;  %v4624_v14 = vpack.c.bf16 %v3835_v22, %v3817_v2  ;;  %vm4635_vm6 = vnez %v4634_v37  ;;  %v4636_v2 = vpack.c.bf16 %v3959_v60, %v3951_v19  ;;  %v4637_v22 = vld [vmem:[#allocation20_spill] sm:$0xff] }
 0x230   : > { %vm4623_vm7 = vnez %v4622_v10  ;;  %vm4638_vm14 = vnez %v4637_v22  ;;  %v4651_v22 = vpack.c.bf16 %v4087_v1, %v4073_v55  ;;  %v4654_v1 = vpack.c.bf16 %v4114_v18, %v4102_v52 }
 0x231   : > { %v1603_v7 = vrot.slane %v1570_v20, 7  ;;  %v1699_v16 = vrot.slane %v1570_v20, 1  ;;  %v1810_v26 = vpack.c.bf16 %v1570_v20, %v1568_v62  ;;  %v4176_v62 = vpop.f32.mrf.mxu1  ;;  %v4625_v20 = vld [vmem:[#allocation16_spill] sm:$0xff] }
 0x232   : > { %vm4626_vm5 = vnez %v4625_v20 }
 0x233   : > { %2180 = vmatmul.bf16.gmra.mxu0 %v1810_v26  ;;  %v1635_v17 = vsel %vm4610_vm3, %v1603_v7, %v4609_v56  ;;  %v1700_v47 = vsel %vm4611_vm1, %v1698_v36, %v1699_v16  ;;  %v1731_v42 = vsel %vm4613_vm10, %v1699_v16, %v4612_v40  ;;  %v4174_v13 = vsel %vm4614_vm9, %v1602_v29, %v1603_v7  ;;  %v4615_v26 = vld [vmem:[#allocation22_spill] sm:$0xff]  ;;  %v4616_v36 = vld [vmem:[#allocation12_spill] sm:$0xff]  ;;  %v4628_v7 = vld [vmem:[#allocation17_spill] sm:$0xff] }
 0x234   : > { %v2714_v27 = vpack.c.bf16 %v4615_v26, %v1635_v17  ;;  %v2838_v63 = vpack.c.bf16 %v1731_v42, %v1700_v47  ;;  %v2774_v56 = vpack.c.bf16 %v4174_v13, %v4156_v6  ;;  %vm4617_vm15 = vnez %v4616_v36  ;;  %v4619_v29 = vld [vmem:[#allocation14_spill] sm:$0xff]  ;;  %v2126_v42 = vpop.f32.mrf.mxu0  ;;  %v4646_v36 = vld [vmem:[#allocation7_spill] sm:$0xff] }
 0x235   : > { %vm4620_vm12 = vnez %v4619_v29  ;;  %v4642_v17 = vpack.c.bf16 %v4008_v54, %v3998_v9  ;;  %v4643_v47 = vld [vmem:[#allocation6_spill] sm:$0xff]  ;;  %vm4647_vm13 = vnez %v4646_v36 }
 0x236   : > { %2715 = vmatmul.msk.bf16.vlgmr.msrb.gmra.mxu3 %vm4617_vm15, %v2714_v27  ;;  %vm4644_vm11 = vnez %v4643_v47 }
 0x239   : > { %v4183_v21 = vpop.f32.mrf.mxu1 }
 0x23e   : > { %2839 = vmatmul.msk.bf16.gmra.mxu1 %vm3929_vm2, %v2838_v63  ;;  %vm4629_vm2 = vnez %v4628_v7  ;;  %v4645_v63 = vpack.c.bf16 %v4031_v50, %v4021_v12  ;;  %v4649_v7 = vld [vmem:[#allocation8_spill] sm:$0xff] }
 0x23f   : > { %vm4650_vm0 = vnez %v4649_v7 }
 0x246   : > { %2719 = vmatmul.msk.bf16.gmra.mxu3 %vm4620_vm12, %v4618_v11 }
 0x256   : > { %2723 = vmatmul.msk.bf16.gmra.mxu3 %vm4623_vm7, %v4621_v4 }
 0x266   : > { %2727 = vmatmul.msk.bf16.gmra.mxu3 %vm4626_vm5, %v4624_v14 }
 0x276   : > { %2731 = vmatmul.msk.bf16.gmra.mxu3 %vm4629_vm2, %v4627_v59  ;;  %v4648_v59 = vpack.c.bf16 %v4056_v58, %v4044_v25 }
 0x286   : > { %2735 = vmatmul.msk.bf16.gmra.mxu3 %vm4632_vm4, %v4630_v31 }
 0x296   : > { %2739 = vmatmul.msk.bf16.gmra.mxu3 %vm4635_vm6, %v4633_v32 }
 0x2a6   : > { %2743 = vmatmul.msk.bf16.gmra.mxu3 %vm4638_vm14, %v4636_v2 }
 0x2b6   : > { %2747 = vmatmul.msk.bf16.gmra.mxu3 %vm4641_vm8, %v4639_v30  ;;  %v4652_v30 = vld [vmem:[#allocation9_spill] sm:$0xff] }
 0x2b7   : > { %vm4653_vm3 = vnez %v4652_v30 }
 0x2b9   : > { %v2017_v24 = vpop.f32.mrf.mxu3 }
 0x2ba   : > { %v2018_v35 = vadd.f32 %v4230_v28, %v2017_v24 }
 0x2bc   : > { %v2107_v23 = vadd.f32 %v4046_v44, %v2018_v35 }
 0x2be   : > { %v2196_v19 = vadd.f32 %v4062_v3, %v2107_v23 }
 0x2c0   : > { %2275 = vst [vmem:[%s4238_s17] sm:$0xff] %v2196_v19 }
 0x2c1   : > { %v2019_v60 = vpop.f32.mrf.mxu3 }
 0x2c2   : > { %v2020_v0 = vadd.f32 %v4230_v28, %v2019_v60 }
 0x2c4   : > { %v2109_v34 = vadd.f32 %v4060_v38, %v2020_v0  ;;  %v2215_v38 = vpop.f32.mrf.mxu1  ;;  %v4655_v0 = vld [vmem:[#allocation10_spill] sm:$0xff] }
 0x2c5   : > { %vm4656_vm1 = vnez %v4655_v0 }
 0x2c6   : > { %v2198_v16 = vadd.f32 %v4081_v49, %v2109_v34  ;;  %2751 = vmatmul.msk.bf16.gmra.mxu3 %vm4644_vm11, %v4642_v17 }
 0x2c8   : > { %2276 = vst [vmem:[%s4238_s17 + $0x8] sm:$0xff] %v2198_v16 }
 0x2c9   : > { %v2022_v44 = vpop.f32.mrf.mxu3 }
 0x2ca   : > { %v2023_v3 = vadd.f32 %v4230_v28, %v2022_v44 }
 0x2cc   : > { %v2112_v40 = vadd.f32 %v4079_v45, %v2023_v3  ;;  %v2128_v45 = vpop.f32.mrf.mxu0  ;;  %v2217_v11 = vpop.f32.mrf.mxu1 }
 0x2ce   : > { %v2201_v26 = vadd.f32 %v4104_v46, %v2112_v40 }
 0x2d0   : > { %2277 = vst [vmem:[%s4238_s17 + $0x10] sm:$0xff] %v2201_v26 }
 0x2d1   : > { %v2024_v49 = vpop.f32.mrf.mxu3 }
 0x2d2   : > { %v2025_v27 = vadd.f32 %v4230_v28, %v2024_v49  ;;  %v4657_v49 = vpack.c.bf16 %v4142_v41, %v4128_v43  ;;  %v4660_v43 = vld [vmem:[#allocation13_spill] sm:$0xff] }
 0x2d3   : > { %vm4661_vm9 = vnez %v4660_v43 }
 0x2d4   : > { %v2114_v9 = vadd.f32 %v4096_v39, %v2025_v27  ;;  %v2131_v39 = vpop.f32.mrf.mxu0  ;;  %v2220_v50 = vpop.f32.mrf.mxu1  ;;  %v4658_v27 = vld [vmem:[#allocation11_spill] sm:$0xff] }
 0x2d5   : > { %vm4659_vm10 = vnez %v4658_v27 }
 0x2d6   : > { %v2203_v54 = vadd.f32 %v4120_v8, %v2114_v9  ;;  %2755 = vmatmul.msk.bf16.gmra.mxu3 %vm4647_vm13, %v4645_v63 }
 0x2d8   : > { %2278 = vst [vmem:[%s4238_s17 + $0x18] sm:$0xff] %v2203_v54 }
 0x2d9   : > { %v2027_v46 = vpop.f32.mrf.mxu3 }
 0x2da   : > { %v2028_v29 = vadd.f32 %v4230_v28, %v2027_v46 }
 0x2dc   : > { %v2117_v4 = vadd.f32 %v4118_v5, %v2028_v29  ;;  %v2133_v31 = vpop.f32.mrf.mxu0  ;;  %v2222_v32 = vpop.f32.mrf.mxu1 }
 0x2de   : > { %v2206_v10 = vadd.f32 %v4134_v61, %v2117_v4 }
 0x2e0   : > { %2279 = vst [vmem:[%s4238_s17 + $0x20] sm:$0xff] %v2206_v10 }
 0x2e1   : > { %v2029_v8 = vpop.f32.mrf.mxu3 }
 0x2e2   : > { %v2030_v12 = vadd.f32 %v4230_v28, %v2029_v8 }
 0x2e4   : > { %v2119_v14 = vadd.f32 %v4132_v48, %v2030_v12  ;;  %v2136_v58 = vpop.f32.mrf.mxu0 }
 0x2e6   : > { %v2208_v20 = vadd.f32 %v4150_v15, %v2119_v14  ;;  %2759 = vmatmul.msk.bf16.gmra.mxu3 %vm4650_vm0, %v4648_v59 }
 0x2e8   : > { %2280 = vst [vmem:[%s4238_s17 + $0x28] sm:$0xff] %v2208_v20 }
 0x2e9   : > { %v2032_v5 = vpop.f32.mrf.mxu3 }
 0x2ea   : > { %v2033_v61 = vadd.f32 %v4230_v28, %v2032_v5 }
 0x2ec   : > { %v2122_v53 = vadd.f32 %v4148_v51, %v2033_v61  ;;  %v2225_v51 = vpop.f32.mrf.mxu1  ;;  %v2138_v23 = vpop.f32.mrf.mxu0 }
 0x2ee   : > { %v2211_v48 = vadd.f32 %v4176_v62, %v2122_v53 }
 0x2f0   : > { %2281 = vst [vmem:[%s4238_s17 + $0x30] sm:$0xff] %v2211_v48 }
 0x2f1   : > { %v2034_v15 = vpop.f32.mrf.mxu3 }
 0x2f2   : > { %v2035_v37 = vadd.f32 %v4230_v28, %v2034_v15 }
 0x2f4   : > { %v2124_v25 = vadd.f32 %v4160_v33, %v2035_v37  ;;  %v2227_v33 = vpop.f32.mrf.mxu1  ;;  %v2141_v34 = vpop.f32.mrf.mxu0 }
 0x2f6   : > { %v2213_v2 = vadd.f32 %v4183_v21, %v2124_v25  ;;  %2763 = vmatmul.msk.bf16.gmra.mxu3 %vm4653_vm3, %v4651_v22 }
 0x2f8   : > { %2282 = vst [vmem:[%s4238_s17 + $0x38] sm:$0xff] %v2213_v2 }
 0x2f9   : > { %v2037_v57 = vpop.f32.mrf.mxu3 }
 0x2fa   : > { %v2038_v62 = vadd.f32 %v4230_v28, %v2037_v57 }
 0x2fc   : > { %v2127_v24 = vadd.f32 %v2126_v42, %v2038_v62  ;;  %v2230_v47 = vpop.f32.mrf.mxu1  ;;  %v2143_v26 = vpop.f32.mrf.mxu0 }
 0x2fe   : > { %v2216_v35 = vadd.f32 %v2215_v38, %v2127_v24 }
 0x300   : > { %2283 = vst [vmem:[%s4238_s17 + $0x40] sm:$0xff] %v2216_v35 }
 0x301   : > { %v2039_v19 = vpop.f32.mrf.mxu3 }
 0x302   : > { %v2040_v21 = vadd.f32 %v4230_v28, %v2039_v19 }
 0x304   : > { %v2129_v60 = vadd.f32 %v2128_v45, %v2040_v21  ;;  %v2232_v52 = vpop.f32.mrf.mxu1  ;;  %v2146_v36 = vpop.f32.mrf.mxu0 }
 0x306   : > { %v2218_v55 = vadd.f32 %v2217_v11, %v2129_v60  ;;  %2767 = vmatmul.msk.bf16.gmra.mxu3 %vm4656_vm1, %v4654_v1 }
 0x308   : > { %2284 = vst [vmem:[%s4238_s17 + $0x48] sm:$0xff] %v2218_v55 }
 0x309   : > { %v2042_v16 = vpop.f32.mrf.mxu3 }
 0x30a   : > { %v2043_v17 = vadd.f32 %v4230_v28, %v2042_v16 }
 0x30c   : > { %v2132_v44 = vadd.f32 %v2131_v39, %v2043_v17  ;;  %v2235_v11 = vpop.f32.mrf.mxu1  ;;  %v2148_v41 = vpop.f32.mrf.mxu0 }
 0x30e   : > { %v2221_v3 = vadd.f32 %v2220_v50, %v2132_v44 }
 0x310   : > { %2285 = vst [vmem:[%s4238_s17 + $0x50] sm:$0xff] %v2221_v3 }
 0x311   : > { %v2044_v40 = vpop.f32.mrf.mxu3 }
 0x312   : > { %v2045_v42 = vadd.f32 %v4230_v28, %v2044_v40 }
 0x314   : > { %v2134_v38 = vadd.f32 %v2133_v31, %v2045_v42  ;;  %v2237_v39 = vpop.f32.mrf.mxu1  ;;  %v2151_v20 = vpop.f32.mrf.mxu0 }
 0x316   : > { %v2223_v18 = vadd.f32 %v2222_v32, %v2134_v38  ;;  %2771 = vmatmul.msk.bf16.gmra.mxu3 %vm4659_vm10, %v4657_v49 }
 0x318   : > { %2286 = vst [vmem:[%s4238_s17 + $0x58] sm:$0xff] %v2223_v18 }
 0x319   : > { %v2047_v9 = vpop.f32.mrf.mxu3 }
 0x31a   : > { %v2048_v54 = vadd.f32 %v4230_v28, %v2047_v9 }
 0x31c   : > { %v2137_v63 = vadd.f32 %v2136_v58, %v2048_v54  ;;  %v2240_v5 = vpop.f32.mrf.mxu1  ;;  %v2153_v31 = vpop.f32.mrf.mxu0 }
 0x31e   : > { %v2226_v45 = vadd.f32 %v2225_v51, %v2137_v63 }
 0x320   : > { %2287 = vst [vmem:[%s4238_s17 + $0x60] sm:$0xff] %v2226_v45 }
 0x321   : > { %v2049_v46 = vpop.f32.mrf.mxu3 }
 0x322   : > { %v2050_v29 = vadd.f32 %v4230_v28, %v2049_v46 }
 0x324   : > { %v2139_v4 = vadd.f32 %v2138_v23, %v2050_v29  ;;  %v2242_v32 = vpop.f32.mrf.mxu1  ;;  %v2156_v58 = vpop.f32.mrf.mxu0 }
 0x326   : > { %v2228_v10 = vadd.f32 %v2227_v33, %v2139_v4  ;;  %2775 = vmatmul.msk.bf16.gmra.mxu3 %vm4661_vm9, %v2774_v56 }
 0x328   : > { %2288 = vst [vmem:[%s4238_s17 + $0x68] sm:$0xff] %v2228_v10 }
 0x329   : > { %v2052_v8 = vpop.f32.mrf.mxu3 }
 0x32a   : > { %v2053_v12 = vadd.f32 %v4230_v28, %v2052_v8 }
 0x32c   : > { %v2142_v50 = vadd.f32 %v2141_v34, %v2053_v12  ;;  %v2245_v22 = vpop.f32.mrf.mxu1  ;;  %v2158_v24 = vpop.f32.mrf.mxu0 }
 0x32e   : > { %v2231_v14 = vadd.f32 %v2230_v47, %v2142_v50 }
 0x330   : > { %2289 = vst [vmem:[%s4238_s17 + $0x70] sm:$0xff] %v2231_v14 }
 0x331   : > { %v2054_v59 = vpop.f32.mrf.mxu3 }
 0x332   : > { %v2055_v7 = vadd.f32 %v4230_v28, %v2054_v59 }
 0x334   : > { %v2144_v6 = vadd.f32 %v2143_v26, %v2055_v7  ;;  %v2247_v35 = vpop.f32.mrf.mxu1  ;;  %v2161_v60 = vpop.f32.mrf.mxu0 }
 0x336   : > { %v2233_v13 = vadd.f32 %v2232_v52, %v2144_v6 }
 0x338   : > { %2290 = vst [vmem:[%s4238_s17 + $0x78] sm:$0xff] %v2233_v13 }
 0x339   : > { %v2057_v56 = vpop.f32.mrf.mxu3 }
 0x33a   : > { %v2058_v61 = vadd.f32 %v4230_v28, %v2057_v56 }
 0x33c   : > { %v2147_v53 = vadd.f32 %v2146_v36, %v2058_v61  ;;  %v2250_v0 = vpop.f32.mrf.mxu1  ;;  %v2163_v44 = vpop.f32.mrf.mxu0 }
 0x33e   : > { %v2236_v48 = vadd.f32 %v2235_v11, %v2147_v53 }
 0x340   : > { %2291 = vst [vmem:[%s4238_s17 + $0x80] sm:$0xff] %v2236_v48 }
 0x341   : > { %v2059_v15 = vpop.f32.mrf.mxu3 }
 0x342   : > { %v2060_v37 = vadd.f32 %v4230_v28, %v2059_v15 }
 0x344   : > { %v2149_v25 = vadd.f32 %v2148_v41, %v2060_v37  ;;  %v2252_v40 = vpop.f32.mrf.mxu1  ;;  %v2166_v18 = vpop.f32.mrf.mxu0 }
 0x346   : > { %v2238_v2 = vadd.f32 %v2237_v39, %v2149_v25 }
 0x348   : > { %2292 = vst [vmem:[%s4238_s17 + $0x88] sm:$0xff] %v2238_v2 }
 0x349   : > { %v2062_v30 = vpop.f32.mrf.mxu3 }
 0x34a   : > { %v2063_v51 = vadd.f32 %v4230_v28, %v2062_v30 }
 0x34c   : > { %v2152_v57 = vadd.f32 %v2151_v20, %v2063_v51  ;;  %v2255_v27 = vpop.f32.mrf.mxu1  ;;  %v2168_v45 = vpop.f32.mrf.mxu0 }
 0x34e   : > { %v2241_v62 = vadd.f32 %v2240_v5, %v2152_v57 }
 0x350   : > { %2293 = vst [vmem:[%s4238_s17 + $0x90] sm:$0xff] %v2241_v62 }
 0x351   : > { %v2064_v23 = vpop.f32.mrf.mxu3 }
 0x352   : > { %v2065_v33 = vadd.f32 %v4230_v28, %v2064_v23 }
 0x354   : > { %v2154_v19 = vadd.f32 %v2153_v31, %v2065_v33  ;;  %v2257_v11 = vpop.f32.mrf.mxu1  ;;  %v2171_v43 = vpop.f32.mrf.mxu0 }
 0x356   : > { %v2243_v21 = vadd.f32 %v2242_v32, %v2154_v19 }
 0x358   : > { %2294 = vst [vmem:[%s4238_s17 + $0x98] sm:$0xff] %v2243_v21 }
 0x359   : > { %v2067_v55 = vpop.f32.mrf.mxu3 }
 0x35a   : > { %v2068_v1 = vadd.f32 %v4230_v28, %v2067_v55 }
 0x35c   : > { %v2157_v34 = vadd.f32 %v2156_v58, %v2068_v1  ;;  %v2260_v8 = vpop.f32.mrf.mxu1  ;;  %v2173_v59 = vpop.f32.mrf.mxu0 }
 0x35e   : > { %v2246_v16 = vadd.f32 %v2245_v22, %v2157_v34 }
 0x360   : > { %2295 = vst [vmem:[%s4238_s17 + $0xa0] sm:$0xff] %v2246_v16 }
 0x361   : > { %v2069_v17 = vpop.f32.mrf.mxu3 }
 0x362   : > { %v2070_v47 = vadd.f32 %v4230_v28, %v2069_v17 }
 0x364   : > { %v2159_v3 = vadd.f32 %v2158_v24, %v2070_v47  ;;  %v2262_v5 = vpop.f32.mrf.mxu1  ;;  %v2176_v31 = vpop.f32.mrf.mxu0 }
 0x366   : > { %v2248_v42 = vadd.f32 %v2247_v35, %v2159_v3 }
 0x368   : > { %2296 = vst [vmem:[%s4238_s17 + $0xa8] sm:$0xff] %v2248_v42 }
 0x369   : > { %v2072_v26 = vpop.f32.mrf.mxu3 }
 0x36a   : > { %v2073_v38 = vadd.f32 %v4230_v28, %v2072_v26 }
 0x36c   : > { %v2162_v52 = vadd.f32 %v2161_v60, %v2073_v38  ;;  %v2265_v32 = vpop.f32.mrf.mxu1  ;;  %v2178_v58 = vpop.f32.mrf.mxu0 }
 0x36e   : > { %v2251_v49 = vadd.f32 %v2250_v0, %v2162_v52 }
 0x370   : > { %2297 = vst [vmem:[%s4238_s17 + $0xb0] sm:$0xff] %v2251_v49 }
 0x371   : > { %v2074_v9 = vpop.f32.mrf.mxu3 }
 0x372   : > { %v2075_v54 = vadd.f32 %v4230_v28, %v2074_v9 }
 0x374   : > { %v2164_v63 = vadd.f32 %v2163_v44, %v2075_v54  ;;  %v2267_v2 = vpop.f32.mrf.mxu1  ;;  %v2181_v62 = vpop.f32.mrf.mxu0 }
 0x376   : > { %v2253_v36 = vadd.f32 %v2252_v40, %v2164_v63 }
 0x378   : > { %2298 = vst [vmem:[%s4238_s17 + $0xb8] sm:$0xff] %v2253_v36 }
 0x379   : > { %v2077_v46 = vpop.f32.mrf.mxu3 }
 0x37a   : > { %v2078_v29 = vadd.f32 %v4230_v28, %v2077_v46 }
 0x37c   : > { %v2167_v4 = vadd.f32 %v2166_v18, %v2078_v29  ;;  %v2270_v23 = vpop.f32.mrf.mxu1  ;;  %v2183_v55 = vpop.f32.mrf.mxu0 }
 0x37e   : > { %v2256_v10 = vadd.f32 %v2255_v27, %v2167_v4 }
 0x380   : > { %2299 = vst [vmem:[%s4238_s17 + $0xc0] sm:$0xff] %v2256_v10 }
 0x381   : > { %v2079_v41 = vpop.f32.mrf.mxu3 }
 0x382   : > { %v2080_v39 = vadd.f32 %v4230_v28, %v2079_v41 }
 0x384   : > { %v2169_v12 = vadd.f32 %v2168_v45, %v2080_v39  ;;  %v2272_v0 = vpop.f32.mrf.mxu1 }
 0x386   : > { %v2258_v50 = vadd.f32 %v2257_v11, %v2169_v12 }
 0x388   : > { %2300 = vst [vmem:[%s4238_s17 + $0xc8] sm:$0xff] %v2258_v50 }
 0x389   : > { %v2082_v14 = vpop.f32.mrf.mxu3 }
 0x38a   : > { %v2083_v20 = vadd.f32 %v4230_v28, %v2082_v14 }
 0x38c   : > { %v2172_v7 = vadd.f32 %v2171_v43, %v2083_v20 }
 0x38e   : > { %v2261_v6 = vadd.f32 %v2260_v8, %v2172_v7 }
 0x390   : > { %2301 = vst [vmem:[%s4238_s17 + $0xd0] sm:$0xff] %v2261_v6 }
 0x391   : > { %v2084_v13 = vpop.f32.mrf.mxu3 }
 0x392   : > { %v2085_v56 = vadd.f32 %v4230_v28, %v2084_v13 }
 0x394   : > { %v2174_v61 = vadd.f32 %v2173_v59, %v2085_v56 }
 0x396   : > { %v2263_v53 = vadd.f32 %v2262_v5, %v2174_v61 }
 0x398   : > { %2302 = vst [vmem:[%s4238_s17 + $0xd8] sm:$0xff] %v2263_v53 }
 0x399   : > { %v2087_v48 = vpop.f32.mrf.mxu3 }
 0x39a   : > { %v2088_v15 = vadd.f32 %v4230_v28, %v2087_v48 }
 0x39c   : > { %v2177_v37 = vadd.f32 %v2176_v31, %v2088_v15 }
 0x39e   : > { %v2266_v25 = vadd.f32 %v2265_v32, %v2177_v37 }
 0x3a0   : > { %2303 = vst [vmem:[%s4238_s17 + $0xe0] sm:$0xff] %v2266_v25 }
 0x3a1   : > { %v2089_v22 = vpop.f32.mrf.mxu3 }
 0x3a2   : > { %v2090_v30 = vadd.f32 %v4230_v28, %v2089_v22 }
 0x3a4   : > { %v2179_v51 = vadd.f32 %v2178_v58, %v2090_v30 }
 0x3a6   : > { %v2268_v57 = vadd.f32 %v2267_v2, %v2179_v51 }
 0x3a8   : > { %2304 = vst [vmem:[%s4238_s17 + $0xe8] sm:$0xff] %v2268_v57 }
 0x3a9   : > { %v2092_v24 = vpop.f32.mrf.mxu3 }
 0x3aa   : > { %v2093_v35 = vadd.f32 %v4230_v28, %v2092_v24 }
 0x3ac   : > { %v2182_v33 = vadd.f32 %v2181_v62, %v2093_v35 }
 0x3ae   : > { %v2271_v19 = vadd.f32 %v2270_v23, %v2182_v33 }
 0x3b0   : > { %2305 = vst [vmem:[%s4238_s17 + $0xf0] sm:$0xff] %v2271_v19 }
 0x3b1   : > { %v2094_v21 = vpop.f32.mrf.mxu3 }
 0x3b2   : > { %v2095_v60 = vadd.f32 %v4230_v28, %v2094_v21 }
 0x3b4   : > { %v2184_v1 = vadd.f32 %v2183_v55, %v2095_v60 }
 0x3b6   : > { %v2273_v34 = vadd.f32 %v2272_v0, %v2184_v1 }
 0x3b8   : > { %2306 = vst [vmem:[%s4238_s17 + $0xf8] sm:$0xff] %v2273_v34 }
 0x3b9   : > { %3013 = shalt.err (!%p3010_p3)
}
 0x3ba   : > { %s3051_s15 = smov 128   ;;  %s3052_s16 = smov 8  }
 0x3bb   : > { %2942 = dma.vmem_to_hbm [thread:$0]  (%p3121_p5), %s2321_s6, 4096, %s2323_s7, %s2308_s22, %s3051_s15, %s3051_s15, %s3052_s16  }
 0x3bc PF: > { %p2948_p4 = scmp.ge.s32.totalorder %s3048_s21, 2  ;;  %s2337_s17 = sand.u32 1, %s3036_s18  }
 0x3bd   : > { %s2338_s23 = scalar_lea.sflag [#allocation3], %s2337_s17 }
 0x3be   : > { %p2945_p7 = pnand %p2948_p4, %p3125_p6 }
 0x3c0   : > { %p2946_p8 = pneg %p2945_p7 }
 0x3c2   : > { %3031 = dma.done.wait (%p2946_p8), %s2338_s23, 4096  }
 0x3c3   : > { %3033 = vsyncadd (%p2946_p8), %s2338_s23, 4294963200  ;;  %p15_p9 = scmp.ge.s32.totalorder %s3108_s24, 4   ;;  %s4662_s18 = smov %s3040_s19 }
 0x3c4   : > { %s4663_s19 = smov %s3044_s20  ;;  %s4664_s20 = smov %s3119_s27 }
 0x3c5   : > { %s4665_s21 = smov %s3108_s24  ;;  %17 = sbr.rel (!%p15_p9) target bundleno = 3 (0x3), region = 75 }
 0x3ca   :  { %2344 = vsyncpa [#allocation3], 1 }
 0x3cb   :  { %2346 = vsyncpa [#allocation3 + $0x1], 1 }

</bundles_post_ra>
